<compile_context>
chip_gen: v7x
topology: tpu7x:2x2x1
jax: 0.10.0
libtpu: 0.0.40
codegen_flags: <defaults>
</compile_context>

<pallas_src>
import functools

import jax
import jax.numpy as jnp
import numpy as np
from jax import lax
from jax.experimental import pallas as pl
from jax.experimental.pallas import tpu as pltpu

LEAKY_SLOPE = 0.01  # PyTorch nn.LeakyReLU default negative_slope


# ------------------------------ fused Pallas kernel ------------------------------

def _midnet_kernel(x_ref, xp_ref, m_ref, w1_ref, w2p_ref, ws_ref, b_ref, o_ref,
                   *, W, Out):
    """Fused MidNet forward for one batch element.

    Layouts (channels-first, spatial flattened onto the lane axis):
      x_ref   : (1, In_pad, HW)    bf16  input image (channels zero-padded to 8k)
      xp_ref  : (1, Op_pad, HW)    bf16  auxiliary features (zero-padded)
      m_ref   : (9, 1, HW)         f32   per-tap 0/1 boundary masks (trace-time consts)
      w1_ref  : (9*Out, In_pad)    bf16  conv1, tap-stacked rows = t*Out + o
      w2p_ref : (9*Out, Op_pad)    bf16  c2a weights acting on xp (tap-stacked)
      ws_ref  : (6, 9*Out, Out)    bf16  c2a_h, rb1, rb2, rb3, rb4, c2b (tap-stacked)
      b_ref   : (7, Out, 1)        f32   biases: conv1, c2a, rb1..rb4, c2b
      o_ref   : (1, Out, HW)       f32   pre-pixel-shuffle output
    """
    f32 = jnp.float32
    bf16 = jnp.bfloat16
    HW = o_ref.shape[-1]

    def tap_accumulate(y):
        """y: (9*Out, HW) f32 = per-tap conv outputs at UNSHIFTED positions.

        out[o, p] = sum_t mask_t[p] * y_t[o, p + s_t]; the shift is a lane roll
        (XLU, off the VALU/MXU critical slots) and the 0/1 mask multiply is exact.
        """
        acc = y[4 * Out:5 * Out, :]                      # center tap: shift 0, always valid
        for t in range(9):
            if t == 4:
                continue
            dy, dx = divmod(t, 3)
            s = (dy - 1) * W + (dx - 1)                  # flat spatial shift of this tap
            slab = pltpu.roll(y[t * Out:(t + 1) * Out, :], (-s) % HW, axis=1)
            acc = acc + slab * m_ref[t]                  # zero wrapped / out-of-image taps
        return acc

    def conv(a_bf16, w):
        """3x3 conv, transposed dataflow: one MXU dot then roll/mask/accumulate.

        a_bf16: (Cin, HW) bf16, w: (9*Out, Cin) bf16 -> (Out, HW) f32.
        """
        return tap_accumulate(jnp.dot(w, a_bf16, preferred_element_type=f32))

    def bias_act(acc, i, leaky=True):
        acc = acc + b_ref[i]                             # (Out, 1) broadcast over lanes
        if leaky:
            acc = jnp.where(acc >= 0, acc, LEAKY_SLOPE * acc)
        return acc

    x = x_ref[0]                                         # (In_pad, HW)  bf16
    xp = xp_ref[0]                                       # (Op_pad, HW)  bf16

    # conv1 = ConvRelu(In, Out)
    h = bias_act(conv(x, w1_ref[...]), 0)

    # conv2[0] = ConvRelu(Out + Outp, Out) on torch.cat((h, xp), 1).
    # The concat is folded into the weights: conv([h; xp]) = conv_h(h) + conv_p(xp);
    # the two per-tap dot outputs are summed BEFORE the shared roll/mask pass.
    y2 = (jnp.dot(ws_ref[0], h.astype(bf16), preferred_element_type=f32)
          + jnp.dot(w2p_ref[...], xp, preferred_element_type=f32))
    g = bias_act(tap_accumulate(y2), 1)

    # conv2[1] = ResidualBlock3(Out): 3x ConvRelu, plain Conv2d, skip add (skip in f32).
    r = g
    for i in range(3):
        r = bias_act(conv(r.astype(bf16), ws_ref[1 + i]), 2 + i)
    r = bias_act(conv(r.astype(bf16), ws_ref[4]), 5, leaky=False)
    h2 = g + r

    # conv2[2] = ConvRelu(Out, Out)
    o_ref[0] = bias_act(conv(h2.astype(bf16), ws_ref[5]), 6).astype(o_ref.dtype)


# ------------------------------ wrapper / weight prep ------------------------------

def _round_up(v, m):
    return -(-v // m) * m


def _w_tapstack(w_hwio, cin_pad=None):
    """(3,3,Cin,Cout) HWIO -> (9*Cout, Cin_pad) bf16; row index = (ky*3+kx)*Cout + o."""
    kh, kw, cin, cout = w_hwio.shape
    if cin_pad is not None and cin_pad > cin:
        w_hwio = jnp.pad(w_hwio, ((0, 0), (0, 0), (0, cin_pad - cin), (0, 0)))
        cin = cin_pad
    w = jnp.transpose(w_hwio, (0, 1, 3, 2)).reshape(kh * kw * cout, cin)
    return w.astype(jnp.bfloat16)


def _boundary_masks(H, W):
    """NumPy (trace-time) 0/1 masks: masks[t, 0, h*W+w] = 1 iff tap t is in-image."""
    hh, ww = np.meshgrid(np.arange(H), np.arange(W), indexing="ij")
    hh = hh.reshape(1, H * W)
    ww = ww.reshape(1, H * W)
    masks = []
    for t in range(9):
        dy, dx = divmod(t, 3)
        dy -= 1
        dx -= 1
        valid = (hh + dy >= 0) & (hh + dy < H) & (ww + dx >= 0) & (ww + dx < W)
        masks.append(valid.astype(np.float32))
    return np.stack(masks)                               # (9, 1, H*W) f32


def _pixel_shuffle_nchw(x, r):
    """PyTorch F.pixel_shuffle: out[n, c, h*r+i, w*r+j] = in[n, c*r*r + i*r + j, h, w]."""
    N, C, H, W = x.shape
    Co = C // (r * r)
    x = x.reshape(N, Co, r, r, H, W)
    x = jnp.transpose(x, (0, 1, 4, 2, 5, 3))
    return x.reshape(N, Co, H * r, W * r)


@jax.jit
def midnet_forward(params, x_nchw, xp_nchw):
    N, In, H, W = x_nchw.shape
    Outp = xp_nchw.shape[1]
    Out = params["conv1"][0].shape[-1]
    HW = H * W
    assert HW % 128 == 0, "lane-dense layout needs H*W to be a multiple of 128"
    assert Out % 8 == 0, "single-dot path assumes Out is sublane (8) aligned"

    In_pad = _round_up(In, 8)
    Op_pad = _round_up(Outp, 8)

    def pad_chan(a, cpad):
        n, c, hh, ww = a.shape
        a = a.reshape(n, c, hh * ww)
        if cpad > c:
            a = jnp.pad(a, ((0, 0), (0, cpad - c), (0, 0)))
        return a.astype(jnp.bfloat16)                    # bf16 in: halves input DMA

    x = pad_chan(x_nchw, In_pad)                         # (N, In_pad, HW) bf16
    xp = pad_chan(xp_nchw, Op_pad)                       # (N, Op_pad, HW) bf16

    w1 = _w_tapstack(params["conv1"][0], In_pad)         # (9*Out, In_pad)
    w2 = params["c2a"][0]                                # (3, 3, Out+Outp, Out)
    w2h = _w_tapstack(w2[:, :, :Out, :])                 # (9*Out, Out)
    w2p = _w_tapstack(w2[:, :, Out:, :], Op_pad)         # (9*Out, Op_pad)
    ws = jnp.stack([w2h] + [_w_tapstack(params[k][0])
                            for k in ("rb1", "rb2", "rb3", "rb4", "c2b")])   # (6, 9*Out, Out)
    bias = jnp.stack([params[k][1]
                      for k in ("conv1", "c2a", "rb1", "rb2", "rb3", "rb4", "c2b")]
                     ).reshape(7, Out, 1)                # (7, Out, 1) f32
    masks = jnp.asarray(_boundary_masks(H, W), jnp.float32)   # (9, 1, HW) constants

    kern = functools.partial(_midnet_kernel, W=W, Out=Out)
    y = pl.pallas_call(
        kern,
        out_shape=jax.ShapeDtypeStruct((N, Out, HW), jnp.float32),
        grid=(N,),
        in_specs=[
            pl.BlockSpec((1, In_pad, HW), lambda n: (n, 0, 0)),
            pl.BlockSpec((1, Op_pad, HW), lambda n: (n, 0, 0)),
            pl.BlockSpec((9, 1, HW), lambda n: (0, 0, 0)),
            pl.BlockSpec((9 * Out, In_pad), lambda n: (0, 0)),
            pl.BlockSpec((9 * Out, Op_pad), lambda n: (0, 0)),
            pl.BlockSpec((6, 9 * Out, Out), lambda n: (0, 0, 0)),
            pl.BlockSpec((7, Out, 1), lambda n: (0, 0, 0)),
        ],
        out_specs=pl.BlockSpec((1, Out, HW), lambda n: (n, 0, 0)),
        compiler_params=pltpu.CompilerParams(
            dimension_semantics=("parallel",)),          # batch over TCs (v7x megacore)
    )(x, xp, masks, w1, w2p, ws, bias)

    y = y.reshape(N, Out, H, W)
    return _pixel_shuffle_nchw(y, 2)                     # F.pixel_shuffle(out, 2)


# ------------------------------ params & pure-JAX reference ------------------------------

def _init_conv(key, cin, cout, scale=0.1):
    kw, kb = jax.random.split(key)
    w = scale * jax.random.normal(kw, (3, 3, cin, cout), jnp.float32)   # HWIO
    b = scale * jax.random.normal(kb, (cout,), jnp.float32)
    return w, b


def init_midnet_params(key, In, Out, Outp):
    keys = jax.random.split(key, 7)
    return {
        "conv1": _init_conv(keys[0], In, Out),          # ConvRelu(In, Out)
        "c2a":   _init_conv(keys[1], Out + Outp, Out),  # ConvRelu(Out+Outp, Out)
        "rb1":   _init_conv(keys[2], Out, Out),         # ResidualBlock3: ConvRelu
        "rb2":   _init_conv(keys[3], Out, Out),         # ResidualBlock3: ConvRelu
        "rb3":   _init_conv(keys[4], Out, Out),         # ResidualBlock3: ConvRelu
        "rb4":   _init_conv(keys[5], Out, Out),         # ResidualBlock3: plain Conv2d
        "c2b":   _init_conv(keys[6], Out, Out),         # ConvRelu(Out, Out)
    }


def _conv_ref(x_nchw, w_hwio, b, *, leaky):
    y = lax.conv_general_dilated(
        x_nchw, w_hwio, window_strides=(1, 1), padding=((1, 1), (1, 1)),
        dimension_numbers=("NCHW", "HWIO", "NCHW"))
    y = y + b[None, :, None, None]
    if leaky:
        y = jnp.where(y >= 0, y, LEAKY_SLOPE * y)
    return y


@jax.jit
def midnet_ref(params, x, xp):
    out = _conv_ref(x, *params["conv1"], leaky=True)
    cat = jnp.concatenate([out, xp], axis=1)             # torch.cat(..., dim=1)
    h = _conv_ref(cat, *params["c2a"], leaky=True)
    r = _conv_ref(h, *params["rb1"], leaky=True)
    r = _conv_ref(r, *params["rb2"], leaky=True)
    r = _conv_ref(r, *params["rb3"], leaky=True)
    r = _conv_ref(r, *params["rb4"], leaky=False)
    h = h + r
    h = _conv_ref(h, *params["c2b"], leaky=True)
    return _pixel_shuffle_nchw(h, 2)


# ------------------------------------ main ------------------------------------

if __name__ == "__main__":
    In, Out, Outp = 4, 8, 4          # Out divisible by 4 (pixel_shuffle upscale=2)
    N, H, W = 2, 16, 16

    key = jax.random.PRNGKey(0)
    kp, kx, kxp = jax.random.split(key, 3)
    params = init_midnet_params(kp, In, Out, Outp)
    x = jax.random.normal(kx, (N, In, H, W), jnp.float32)
    xp_in = jax.random.normal(kxp, (N, Outp, H, W), jnp.float32)

    y = jax.block_until_ready(midnet_forward(params, x, xp_in))
    assert y.shape == (N, Out // 4, 2 * H, 2 * W), y.shape

    # Cross-check the fused Pallas kernel against a pure-f32 JAX reference.
    # The kernel feeds bf16 operands to the MXU (f32 accumulation everywhere,
    # f32 residual skip), hence the loosened tolerance.
    y_ref = jax.block_until_ready(midnet_ref(params, x, xp_in))
    np.testing.assert_allclose(np.asarray(y), np.asarray(y_ref), rtol=5e-2, atol=5e-2)

    print("KERNEL_OK")
</pallas_src>

<mosaic_0001>
module attributes {stable_mosaic.version = 11 : i64} {
  func.func @_midnet_kernel(%arg0: i32, %arg1: memref<1x8x256xbf16, #tpu.memory_space<vmem>>, %arg2: memref<1x8x256xbf16, #tpu.memory_space<vmem>>, %arg3: memref<9x1x256xf32, #tpu.memory_space<vmem>>, %arg4: memref<72x8xbf16, #tpu.memory_space<vmem>>, %arg5: memref<72x8xbf16, #tpu.memory_space<vmem>>, %arg6: memref<6x72x8xbf16, #tpu.memory_space<vmem>>, %arg7: memref<7x8x1xf32, #tpu.memory_space<vmem>>, %arg8: memref<1x8x256xf32, #tpu.memory_space<vmem>>) attributes {dimension_semantics = [#tpu.dimension_semantics<parallel>], iteration_bounds = array<i64: 2>, scalar_prefetch = 0 : i64, scratch_operands = 0 : i64, tpu.core_type = #tpu.core_type<tc>, window_params = [{transform_indices = @transform_0, window_bounds = array<i64: 1, 8, 256>}, {transform_indices = @transform_1, window_bounds = array<i64: 1, 8, 256>}, {pipeline_mode = #tpu.pipeline_mode<synchronous>, transform_indices = @transform_2, window_bounds = array<i64: 9, 1, 256>}, {pipeline_mode = #tpu.pipeline_mode<synchronous>, transform_indices = @transform_3, window_bounds = array<i64: 72, 8>}, {pipeline_mode = #tpu.pipeline_mode<synchronous>, transform_indices = @transform_4, window_bounds = array<i64: 72, 8>}, {pipeline_mode = #tpu.pipeline_mode<synchronous>, transform_indices = @transform_5, window_bounds = array<i64: 6, 72, 8>}, {pipeline_mode = #tpu.pipeline_mode<synchronous>, transform_indices = @transform_6, window_bounds = array<i64: 7, 8, 1>}, {transform_indices = @transform_7, window_bounds = array<i64: 1, 8, 256>}]} {
    %c0 = arith.constant 0 : index
    %c0_0 = arith.constant 0 : index
    %c0_1 = arith.constant 0 : index
    %0 = vector.load %arg1[%c0, %c0_0, %c0_1] : memref<1x8x256xbf16, #tpu.memory_space<vmem>>, vector<1x8x256xbf16>
    %1 = vector.shape_cast %0 : vector<1x8x256xbf16> to vector<8x256xbf16>
    %c0_2 = arith.constant 0 : index
    %c0_3 = arith.constant 0 : index
    %c0_4 = arith.constant 0 : index
    %2 = vector.load %arg2[%c0_2, %c0_3, %c0_4] : memref<1x8x256xbf16, #tpu.memory_space<vmem>>, vector<1x8x256xbf16>
    %3 = vector.shape_cast %2 : vector<1x8x256xbf16> to vector<8x256xbf16>
    %c0_5 = arith.constant 0 : index
    %c0_6 = arith.constant 0 : index
    %4 = vector.load %arg4[%c0_5, %c0_6] : memref<72x8xbf16, #tpu.memory_space<vmem>>, vector<72x8xbf16>
    %cst = arith.constant dense<0.000000e+00> : vector<72x256xf32>
    %5 = tpu.matmul %4, %1, %cst {dimension_numbers = #tpu.dot_dimension_numbers<[1], [0], [0], [1], [0, 0, 1, 1], [], []>} : vector<72x8xbf16>, vector<8x256xbf16>, vector<72x256xf32> -> vector<72x256xf32>
    %6 = vector.extract_strided_slice %5 {offsets = [32, 0], sizes = [8, 256], strides = [1, 1]} : vector<72x256xf32> to vector<8x256xf32>
    %7 = vector.extract_strided_slice %5 {offsets = [0, 0], sizes = [8, 256], strides = [1, 1]} : vector<72x256xf32> to vector<8x256xf32>
    %c17_i32 = arith.constant 17 : i32
    %8 = tpu.dynamic_rotate %7 by %c17_i32 dim 1 : vector<8x256xf32>, i32 -> vector<8x256xf32>
    %c0_7 = arith.constant 0 : index
    %c0_8 = arith.constant 0 : index
    %c0_9 = arith.constant 0 : index
    %9 = vector.load %arg3[%c0_7, %c0_8, %c0_9] : memref<9x1x256xf32, #tpu.memory_space<vmem>>, vector<1x1x256xf32>
    %10 = vector.shape_cast %9 : vector<1x1x256xf32> to vector<1x256xf32>
    %11 = vector.broadcast %10 : vector<1x256xf32> to vector<8x256xf32>
    %12 = arith.mulf %8, %11 : vector<8x256xf32>
    %13 = arith.addf %6, %12 : vector<8x256xf32>
    %14 = vector.extract_strided_slice %5 {offsets = [8, 0], sizes = [8, 256], strides = [1, 1]} : vector<72x256xf32> to vector<8x256xf32>
    %c16_i32 = arith.constant 16 : i32
    %15 = tpu.dynamic_rotate %14 by %c16_i32 dim 1 : vector<8x256xf32>, i32 -> vector<8x256xf32>
    %c1 = arith.constant 1 : index
    %c0_10 = arith.constant 0 : index
    %c0_11 = arith.constant 0 : index
    %16 = vector.load %arg3[%c1, %c0_10, %c0_11] : memref<9x1x256xf32, #tpu.memory_space<vmem>>, vector<1x1x256xf32>
    %17 = vector.shape_cast %16 : vector<1x1x256xf32> to vector<1x256xf32>
    %18 = vector.broadcast %17 : vector<1x256xf32> to vector<8x256xf32>
    %19 = arith.mulf %15, %18 : vector<8x256xf32>
    %20 = arith.addf %13, %19 : vector<8x256xf32>
    %21 = vector.extract_strided_slice %5 {offsets = [16, 0], sizes = [8, 256], strides = [1, 1]} : vector<72x256xf32> to vector<8x256xf32>
    %c15_i32 = arith.constant 15 : i32
    %22 = tpu.dynamic_rotate %21 by %c15_i32 dim 1 : vector<8x256xf32>, i32 -> vector<8x256xf32>
    %c2 = arith.constant 2 : index
    %c0_12 = arith.constant 0 : index
    %c0_13 = arith.constant 0 : index
    %23 = vector.load %arg3[%c2, %c0_12, %c0_13] : memref<9x1x256xf32, #tpu.memory_space<vmem>>, vector<1x1x256xf32>
    %24 = vector.shape_cast %23 : vector<1x1x256xf32> to vector<1x256xf32>
    %25 = vector.broadcast %24 : vector<1x256xf32> to vector<8x256xf32>
    %26 = arith.mulf %22, %25 : vector<8x256xf32>
    %27 = arith.addf %20, %26 : vector<8x256xf32>
    %28 = vector.extract_strided_slice %5 {offsets = [24, 0], sizes = [8, 256], strides = [1, 1]} : vector<72x256xf32> to vector<8x256xf32>
    %c1_i32 = arith.constant 1 : i32
    %29 = tpu.dynamic_rotate %28 by %c1_i32 dim 1 : vector<8x256xf32>, i32 -> vector<8x256xf32>
    %c3 = arith.constant 3 : index
    %c0_14 = arith.constant 0 : index
    %c0_15 = arith.constant 0 : index
    %30 = vector.load %arg3[%c3, %c0_14, %c0_15] : memref<9x1x256xf32, #tpu.memory_space<vmem>>, vector<1x1x256xf32>
    %31 = vector.shape_cast %30 : vector<1x1x256xf32> to vector<1x256xf32>
    %32 = vector.broadcast %31 : vector<1x256xf32> to vector<8x256xf32>
    %33 = arith.mulf %29, %32 : vector<8x256xf32>
    %34 = arith.addf %27, %33 : vector<8x256xf32>
    %35 = vector.extract_strided_slice %5 {offsets = [40, 0], sizes = [8, 256], strides = [1, 1]} : vector<72x256xf32> to vector<8x256xf32>
    %c255_i32 = arith.constant 255 : i32
    %36 = tpu.dynamic_rotate %35 by %c255_i32 dim 1 : vector<8x256xf32>, i32 -> vector<8x256xf32>
    %c5 = arith.constant 5 : index
    %c0_16 = arith.constant 0 : index
    %c0_17 = arith.constant 0 : index
    %37 = vector.load %arg3[%c5, %c0_16, %c0_17] : memref<9x1x256xf32, #tpu.memory_space<vmem>>, vector<1x1x256xf32>
    %38 = vector.shape_cast %37 : vector<1x1x256xf32> to vector<1x256xf32>
    %39 = vector.broadcast %38 : vector<1x256xf32> to vector<8x256xf32>
    %40 = arith.mulf %36, %39 : vector<8x256xf32>
    %41 = arith.addf %34, %40 : vector<8x256xf32>
    %42 = vector.extract_strided_slice %5 {offsets = [48, 0], sizes = [8, 256], strides = [1, 1]} : vector<72x256xf32> to vector<8x256xf32>
    %c241_i32 = arith.constant 241 : i32
    %43 = tpu.dynamic_rotate %42 by %c241_i32 dim 1 : vector<8x256xf32>, i32 -> vector<8x256xf32>
    %c6 = arith.constant 6 : index
    %c0_18 = arith.constant 0 : index
    %c0_19 = arith.constant 0 : index
    %44 = vector.load %arg3[%c6, %c0_18, %c0_19] : memref<9x1x256xf32, #tpu.memory_space<vmem>>, vector<1x1x256xf32>
    %45 = vector.shape_cast %44 : vector<1x1x256xf32> to vector<1x256xf32>
    %46 = vector.broadcast %45 : vector<1x256xf32> to vector<8x256xf32>
    %47 = arith.mulf %43, %46 : vector<8x256xf32>
    %48 = arith.addf %41, %47 : vector<8x256xf32>
    %49 = vector.extract_strided_slice %5 {offsets = [56, 0], sizes = [8, 256], strides = [1, 1]} : vector<72x256xf32> to vector<8x256xf32>
    %c240_i32 = arith.constant 240 : i32
    %50 = tpu.dynamic_rotate %49 by %c240_i32 dim 1 : vector<8x256xf32>, i32 -> vector<8x256xf32>
    %c7 = arith.constant 7 : index
    %c0_20 = arith.constant 0 : index
    %c0_21 = arith.constant 0 : index
    %51 = vector.load %arg3[%c7, %c0_20, %c0_21] : memref<9x1x256xf32, #tpu.memory_space<vmem>>, vector<1x1x256xf32>
    %52 = vector.shape_cast %51 : vector<1x1x256xf32> to vector<1x256xf32>
    %53 = vector.broadcast %52 : vector<1x256xf32> to vector<8x256xf32>
    %54 = arith.mulf %50, %53 : vector<8x256xf32>
    %55 = arith.addf %48, %54 : vector<8x256xf32>
    %56 = vector.extract_strided_slice %5 {offsets = [64, 0], sizes = [8, 256], strides = [1, 1]} : vector<72x256xf32> to vector<8x256xf32>
    %c239_i32 = arith.constant 239 : i32
    %57 = tpu.dynamic_rotate %56 by %c239_i32 dim 1 : vector<8x256xf32>, i32 -> vector<8x256xf32>
    %c8 = arith.constant 8 : index
    %c0_22 = arith.constant 0 : index
    %c0_23 = arith.constant 0 : index
    %58 = vector.load %arg3[%c8, %c0_22, %c0_23] : memref<9x1x256xf32, #tpu.memory_space<vmem>>, vector<1x1x256xf32>
    %59 = vector.shape_cast %58 : vector<1x1x256xf32> to vector<1x256xf32>
    %60 = vector.broadcast %59 : vector<1x256xf32> to vector<8x256xf32>
    %61 = arith.mulf %57, %60 : vector<8x256xf32>
    %62 = arith.addf %55, %61 : vector<8x256xf32>
    %c0_24 = arith.constant 0 : index
    %c0_25 = arith.constant 0 : index
    %c0_26 = arith.constant 0 : index
    %63 = vector.load %arg7[%c0_24, %c0_25, %c0_26] : memref<7x8x1xf32, #tpu.memory_space<vmem>>, vector<1x8x1xf32>
    %64 = vector.shape_cast %63 : vector<1x8x1xf32> to vector<8x1xf32>
    %65 = vector.broadcast %64 : vector<8x1xf32> to vector<8x256xf32>
    %66 = arith.addf %62, %65 : vector<8x256xf32>
    %cst_27 = arith.constant 0.000000e+00 : f32
    %67 = vector.broadcast %cst_27 : f32 to vector<8x256xf32>
    %68 = arith.cmpf oge, %66, %67 : vector<8x256xf32>
    %cst_28 = arith.constant 0.00999999977 : f32
    %69 = vector.broadcast %cst_28 : f32 to vector<8x256xf32>
    %70 = arith.mulf %69, %66 : vector<8x256xf32>
    %71 = arith.select %68, %66, %70 : vector<8x256xi1>, vector<8x256xf32>
    %c0_29 = arith.constant 0 : index
    %c0_30 = arith.constant 0 : index
    %c0_31 = arith.constant 0 : index
    %72 = vector.load %arg6[%c0_29, %c0_30, %c0_31] : memref<6x72x8xbf16, #tpu.memory_space<vmem>>, vector<1x72x8xbf16>
    %73 = vector.shape_cast %72 : vector<1x72x8xbf16> to vector<72x8xbf16>
    %74 = arith.truncf %71 : vector<8x256xf32> to vector<8x256xbf16>
    %cst_32 = arith.constant dense<0.000000e+00> : vector<72x256xf32>
    %75 = tpu.matmul %73, %74, %cst_32 {dimension_numbers = #tpu.dot_dimension_numbers<[1], [0], [0], [1], [0, 0, 1, 1], [], []>} : vector<72x8xbf16>, vector<8x256xbf16>, vector<72x256xf32> -> vector<72x256xf32>
    %c0_33 = arith.constant 0 : index
    %c0_34 = arith.constant 0 : index
    %76 = vector.load %arg5[%c0_33, %c0_34] : memref<72x8xbf16, #tpu.memory_space<vmem>>, vector<72x8xbf16>
    %cst_35 = arith.constant dense<0.000000e+00> : vector<72x256xf32>
    %77 = tpu.matmul %76, %3, %cst_35 {dimension_numbers = #tpu.dot_dimension_numbers<[1], [0], [0], [1], [0, 0, 1, 1], [], []>} : vector<72x8xbf16>, vector<8x256xbf16>, vector<72x256xf32> -> vector<72x256xf32>
    %78 = arith.addf %75, %77 : vector<72x256xf32>
    %79 = vector.extract_strided_slice %78 {offsets = [32, 0], sizes = [8, 256], strides = [1, 1]} : vector<72x256xf32> to vector<8x256xf32>
    %80 = vector.extract_strided_slice %78 {offsets = [0, 0], sizes = [8, 256], strides = [1, 1]} : vector<72x256xf32> to vector<8x256xf32>
    %c17_i32_36 = arith.constant 17 : i32
    %81 = tpu.dynamic_rotate %80 by %c17_i32_36 dim 1 : vector<8x256xf32>, i32 -> vector<8x256xf32>
    %c0_37 = arith.constant 0 : index
    %c0_38 = arith.constant 0 : index
    %c0_39 = arith.constant 0 : index
    %82 = vector.load %arg3[%c0_37, %c0_38, %c0_39] : memref<9x1x256xf32, #tpu.memory_space<vmem>>, vector<1x1x256xf32>
    %83 = vector.shape_cast %82 : vector<1x1x256xf32> to vector<1x256xf32>
    %84 = vector.broadcast %83 : vector<1x256xf32> to vector<8x256xf32>
    %85 = arith.mulf %81, %84 : vector<8x256xf32>
    %86 = arith.addf %79, %85 : vector<8x256xf32>
    %87 = vector.extract_strided_slice %78 {offsets = [8, 0], sizes = [8, 256], strides = [1, 1]} : vector<72x256xf32> to vector<8x256xf32>
    %c16_i32_40 = arith.constant 16 : i32
    %88 = tpu.dynamic_rotate %87 by %c16_i32_40 dim 1 : vector<8x256xf32>, i32 -> vector<8x256xf32>
    %c1_41 = arith.constant 1 : index
    %c0_42 = arith.constant 0 : index
    %c0_43 = arith.constant 0 : index
    %89 = vector.load %arg3[%c1_41, %c0_42, %c0_43] : memref<9x1x256xf32, #tpu.memory_space<vmem>>, vector<1x1x256xf32>
    %90 = vector.shape_cast %89 : vector<1x1x256xf32> to vector<1x256xf32>
    %91 = vector.broadcast %90 : vector<1x256xf32> to vector<8x256xf32>
    %92 = arith.mulf %88, %91 : vector<8x256xf32>
    %93 = arith.addf %86, %92 : vector<8x256xf32>
    %94 = vector.extract_strided_slice %78 {offsets = [16, 0], sizes = [8, 256], strides = [1, 1]} : vector<72x256xf32> to vector<8x256xf32>
    %c15_i32_44 = arith.constant 15 : i32
    %95 = tpu.dynamic_rotate %94 by %c15_i32_44 dim 1 : vector<8x256xf32>, i32 -> vector<8x256xf32>
    %c2_45 = arith.constant 2 : index
    %c0_46 = arith.constant 0 : index
    %c0_47 = arith.constant 0 : index
    %96 = vector.load %arg3[%c2_45, %c0_46, %c0_47] : memref<9x1x256xf32, #tpu.memory_space<vmem>>, vector<1x1x256xf32>
    %97 = vector.shape_cast %96 : vector<1x1x256xf32> to vector<1x256xf32>
    %98 = vector.broadcast %97 : vector<1x256xf32> to vector<8x256xf32>
    %99 = arith.mulf %95, %98 : vector<8x256xf32>
    %100 = arith.addf %93, %99 : vector<8x256xf32>
    %101 = vector.extract_strided_slice %78 {offsets = [24, 0], sizes = [8, 256], strides = [1, 1]} : vector<72x256xf32> to vector<8x256xf32>
    %c1_i32_48 = arith.constant 1 : i32
    %102 = tpu.dynamic_rotate %101 by %c1_i32_48 dim 1 : vector<8x256xf32>, i32 -> vector<8x256xf32>
    %c3_49 = arith.constant 3 : index
    %c0_50 = arith.constant 0 : index
    %c0_51 = arith.constant 0 : index
    %103 = vector.load %arg3[%c3_49, %c0_50, %c0_51] : memref<9x1x256xf32, #tpu.memory_space<vmem>>, vector<1x1x256xf32>
    %104 = vector.shape_cast %103 : vector<1x1x256xf32> to vector<1x256xf32>
    %105 = vector.broadcast %104 : vector<1x256xf32> to vector<8x256xf32>
    %106 = arith.mulf %102, %105 : vector<8x256xf32>
    %107 = arith.addf %100, %106 : vector<8x256xf32>
    %108 = vector.extract_strided_slice %78 {offsets = [40, 0], sizes = [8, 256], strides = [1, 1]} : vector<72x256xf32> to vector<8x256xf32>
    %c255_i32_52 = arith.constant 255 : i32
    %109 = tpu.dynamic_rotate %108 by %c255_i32_52 dim 1 : vector<8x256xf32>, i32 -> vector<8x256xf32>
    %c5_53 = arith.constant 5 : index
    %c0_54 = arith.constant 0 : index
    %c0_55 = arith.constant 0 : index
    %110 = vector.load %arg3[%c5_53, %c0_54, %c0_55] : memref<9x1x256xf32, #tpu.memory_space<vmem>>, vector<1x1x256xf32>
    %111 = vector.shape_cast %110 : vector<1x1x256xf32> to vector<1x256xf32>
    %112 = vector.broadcast %111 : vector<1x256xf32> to vector<8x256xf32>
    %113 = arith.mulf %109, %112 : vector<8x256xf32>
    %114 = arith.addf %107, %113 : vector<8x256xf32>
    %115 = vector.extract_strided_slice %78 {offsets = [48, 0], sizes = [8, 256], strides = [1, 1]} : vector<72x256xf32> to vector<8x256xf32>
    %c241_i32_56 = arith.constant 241 : i32
    %116 = tpu.dynamic_rotate %115 by %c241_i32_56 dim 1 : vector<8x256xf32>, i32 -> vector<8x256xf32>
    %c6_57 = arith.constant 6 : index
    %c0_58 = arith.constant 0 : index
    %c0_59 = arith.constant 0 : index
    %117 = vector.load %arg3[%c6_57, %c0_58, %c0_59] : memref<9x1x256xf32, #tpu.memory_space<vmem>>, vector<1x1x256xf32>
    %118 = vector.shape_cast %117 : vector<1x1x256xf32> to vector<1x256xf32>
    %119 = vector.broadcast %118 : vector<1x256xf32> to vector<8x256xf32>
    %120 = arith.mulf %116, %119 : vector<8x256xf32>
    %121 = arith.addf %114, %120 : vector<8x256xf32>
    %122 = vector.extract_strided_slice %78 {offsets = [56, 0], sizes = [8, 256], strides = [1, 1]} : vector<72x256xf32> to vector<8x256xf32>
    %c240_i32_60 = arith.constant 240 : i32
    %123 = tpu.dynamic_rotate %122 by %c240_i32_60 dim 1 : vector<8x256xf32>, i32 -> vector<8x256xf32>
    %c7_61 = arith.constant 7 : index
    %c0_62 = arith.constant 0 : index
    %c0_63 = arith.constant 0 : index
    %124 = vector.load %arg3[%c7_61, %c0_62, %c0_63] : memref<9x1x256xf32, #tpu.memory_space<vmem>>, vector<1x1x256xf32>
    %125 = vector.shape_cast %124 : vector<1x1x256xf32> to vector<1x256xf32>
    %126 = vector.broadcast %125 : vector<1x256xf32> to vector<8x256xf32>
    %127 = arith.mulf %123, %126 : vector<8x256xf32>
    %128 = arith.addf %121, %127 : vector<8x256xf32>
    %129 = vector.extract_strided_slice %78 {offsets = [64, 0], sizes = [8, 256], strides = [1, 1]} : vector<72x256xf32> to vector<8x256xf32>
    %c239_i32_64 = arith.constant 239 : i32
    %130 = tpu.dynamic_rotate %129 by %c239_i32_64 dim 1 : vector<8x256xf32>, i32 -> vector<8x256xf32>
    %c8_65 = arith.constant 8 : index
    %c0_66 = arith.constant 0 : index
    %c0_67 = arith.constant 0 : index
    %131 = vector.load %arg3[%c8_65, %c0_66, %c0_67] : memref<9x1x256xf32, #tpu.memory_space<vmem>>, vector<1x1x256xf32>
    %132 = vector.shape_cast %131 : vector<1x1x256xf32> to vector<1x256xf32>
    %133 = vector.broadcast %132 : vector<1x256xf32> to vector<8x256xf32>
    %134 = arith.mulf %130, %133 : vector<8x256xf32>
    %135 = arith.addf %128, %134 : vector<8x256xf32>
    %c1_68 = arith.constant 1 : index
    %c0_69 = arith.constant 0 : index
    %c0_70 = arith.constant 0 : index
    %136 = vector.load %arg7[%c1_68, %c0_69, %c0_70] : memref<7x8x1xf32, #tpu.memory_space<vmem>>, vector<1x8x1xf32>
    %137 = vector.shape_cast %136 : vector<1x8x1xf32> to vector<8x1xf32>
    %138 = vector.broadcast %137 : vector<8x1xf32> to vector<8x256xf32>
    %139 = arith.addf %135, %138 : vector<8x256xf32>
    %cst_71 = arith.constant 0.000000e+00 : f32
    %140 = vector.broadcast %cst_71 : f32 to vector<8x256xf32>
    %141 = arith.cmpf oge, %139, %140 : vector<8x256xf32>
    %cst_72 = arith.constant 0.00999999977 : f32
    %142 = vector.broadcast %cst_72 : f32 to vector<8x256xf32>
    %143 = arith.mulf %142, %139 : vector<8x256xf32>
    %144 = arith.select %141, %139, %143 : vector<8x256xi1>, vector<8x256xf32>
    %145 = arith.truncf %144 : vector<8x256xf32> to vector<8x256xbf16>
    %c1_73 = arith.constant 1 : index
    %c0_74 = arith.constant 0 : index
    %c0_75 = arith.constant 0 : index
    %146 = vector.load %arg6[%c1_73, %c0_74, %c0_75] : memref<6x72x8xbf16, #tpu.memory_space<vmem>>, vector<1x72x8xbf16>
    %147 = vector.shape_cast %146 : vector<1x72x8xbf16> to vector<72x8xbf16>
    %cst_76 = arith.constant dense<0.000000e+00> : vector<72x256xf32>
    %148 = tpu.matmul %147, %145, %cst_76 {dimension_numbers = #tpu.dot_dimension_numbers<[1], [0], [0], [1], [0, 0, 1, 1], [], []>} : vector<72x8xbf16>, vector<8x256xbf16>, vector<72x256xf32> -> vector<72x256xf32>
    %149 = vector.extract_strided_slice %148 {offsets = [32, 0], sizes = [8, 256], strides = [1, 1]} : vector<72x256xf32> to vector<8x256xf32>
    %150 = vector.extract_strided_slice %148 {offsets = [0, 0], sizes = [8, 256], strides = [1, 1]} : vector<72x256xf32> to vector<8x256xf32>
    %c17_i32_77 = arith.constant 17 : i32
    %151 = tpu.dynamic_rotate %150 by %c17_i32_77 dim 1 : vector<8x256xf32>, i32 -> vector<8x256xf32>
    %c0_78 = arith.constant 0 : index
    %c0_79 = arith.constant 0 : index
    %c0_80 = arith.constant 0 : index
    %152 = vector.load %arg3[%c0_78, %c0_79, %c0_80] : memref<9x1x256xf32, #tpu.memory_space<vmem>>, vector<1x1x256xf32>
    %153 = vector.shape_cast %152 : vector<1x1x256xf32> to vector<1x256xf32>
    %154 = vector.broadcast %153 : vector<1x256xf32> to vector<8x256xf32>
    %155 = arith.mulf %151, %154 : vector<8x256xf32>
    %156 = arith.addf %149, %155 : vector<8x256xf32>
    %157 = vector.extract_strided_slice %148 {offsets = [8, 0], sizes = [8, 256], strides = [1, 1]} : vector<72x256xf32> to vector<8x256xf32>
    %c16_i32_81 = arith.constant 16 : i32
    %158 = tpu.dynamic_rotate %157 by %c16_i32_81 dim 1 : vector<8x256xf32>, i32 -> vector<8x256xf32>
    %c1_82 = arith.constant 1 : index
    %c0_83 = arith.constant 0 : index
    %c0_84 = arith.constant 0 : index
    %159 = vector.load %arg3[%c1_82, %c0_83, %c0_84] : memref<9x1x256xf32, #tpu.memory_space<vmem>>, vector<1x1x256xf32>
    %160 = vector.shape_cast %159 : vector<1x1x256xf32> to vector<1x256xf32>
    %161 = vector.broadcast %160 : vector<1x256xf32> to vector<8x256xf32>
    %162 = arith.mulf %158, %161 : vector<8x256xf32>
    %163 = arith.addf %156, %162 : vector<8x256xf32>
    %164 = vector.extract_strided_slice %148 {offsets = [16, 0], sizes = [8, 256], strides = [1, 1]} : vector<72x256xf32> to vector<8x256xf32>
    %c15_i32_85 = arith.constant 15 : i32
    %165 = tpu.dynamic_rotate %164 by %c15_i32_85 dim 1 : vector<8x256xf32>, i32 -> vector<8x256xf32>
    %c2_86 = arith.constant 2 : index
    %c0_87 = arith.constant 0 : index
    %c0_88 = arith.constant 0 : index
    %166 = vector.load %arg3[%c2_86, %c0_87, %c0_88] : memref<9x1x256xf32, #tpu.memory_space<vmem>>, vector<1x1x256xf32>
    %167 = vector.shape_cast %166 : vector<1x1x256xf32> to vector<1x256xf32>
    %168 = vector.broadcast %167 : vector<1x256xf32> to vector<8x256xf32>
    %169 = arith.mulf %165, %168 : vector<8x256xf32>
    %170 = arith.addf %163, %169 : vector<8x256xf32>
    %171 = vector.extract_strided_slice %148 {offsets = [24, 0], sizes = [8, 256], strides = [1, 1]} : vector<72x256xf32> to vector<8x256xf32>
    %c1_i32_89 = arith.constant 1 : i32
    %172 = tpu.dynamic_rotate %171 by %c1_i32_89 dim 1 : vector<8x256xf32>, i32 -> vector<8x256xf32>
    %c3_90 = arith.constant 3 : index
    %c0_91 = arith.constant 0 : index
    %c0_92 = arith.constant 0 : index
    %173 = vector.load %arg3[%c3_90, %c0_91, %c0_92] : memref<9x1x256xf32, #tpu.memory_space<vmem>>, vector<1x1x256xf32>
    %174 = vector.shape_cast %173 : vector<1x1x256xf32> to vector<1x256xf32>
    %175 = vector.broadcast %174 : vector<1x256xf32> to vector<8x256xf32>
    %176 = arith.mulf %172, %175 : vector<8x256xf32>
    %177 = arith.addf %170, %176 : vector<8x256xf32>
    %178 = vector.extract_strided_slice %148 {offsets = [40, 0], sizes = [8, 256], strides = [1, 1]} : vector<72x256xf32> to vector<8x256xf32>
    %c255_i32_93 = arith.constant 255 : i32
    %179 = tpu.dynamic_rotate %178 by %c255_i32_93 dim 1 : vector<8x256xf32>, i32 -> vector<8x256xf32>
    %c5_94 = arith.constant 5 : index
    %c0_95 = arith.constant 0 : index
    %c0_96 = arith.constant 0 : index
    %180 = vector.load %arg3[%c5_94, %c0_95, %c0_96] : memref<9x1x256xf32, #tpu.memory_space<vmem>>, vector<1x1x256xf32>
    %181 = vector.shape_cast %180 : vector<1x1x256xf32> to vector<1x256xf32>
    %182 = vector.broadcast %181 : vector<1x256xf32> to vector<8x256xf32>
    %183 = arith.mulf %179, %182 : vector<8x256xf32>
    %184 = arith.addf %177, %183 : vector<8x256xf32>
    %185 = vector.extract_strided_slice %148 {offsets = [48, 0], sizes = [8, 256], strides = [1, 1]} : vector<72x256xf32> to vector<8x256xf32>
    %c241_i32_97 = arith.constant 241 : i32
    %186 = tpu.dynamic_rotate %185 by %c241_i32_97 dim 1 : vector<8x256xf32>, i32 -> vector<8x256xf32>
    %c6_98 = arith.constant 6 : index
    %c0_99 = arith.constant 0 : index
    %c0_100 = arith.constant 0 : index
    %187 = vector.load %arg3[%c6_98, %c0_99, %c0_100] : memref<9x1x256xf32, #tpu.memory_space<vmem>>, vector<1x1x256xf32>
    %188 = vector.shape_cast %187 : vector<1x1x256xf32> to vector<1x256xf32>
    %189 = vector.broadcast %188 : vector<1x256xf32> to vector<8x256xf32>
    %190 = arith.mulf %186, %189 : vector<8x256xf32>
    %191 = arith.addf %184, %190 : vector<8x256xf32>
    %192 = vector.extract_strided_slice %148 {offsets = [56, 0], sizes = [8, 256], strides = [1, 1]} : vector<72x256xf32> to vector<8x256xf32>
    %c240_i32_101 = arith.constant 240 : i32
    %193 = tpu.dynamic_rotate %192 by %c240_i32_101 dim 1 : vector<8x256xf32>, i32 -> vector<8x256xf32>
    %c7_102 = arith.constant 7 : index
    %c0_103 = arith.constant 0 : index
    %c0_104 = arith.constant 0 : index
    %194 = vector.load %arg3[%c7_102, %c0_103, %c0_104] : memref<9x1x256xf32, #tpu.memory_space<vmem>>, vector<1x1x256xf32>
    %195 = vector.shape_cast %194 : vector<1x1x256xf32> to vector<1x256xf32>
    %196 = vector.broadcast %195 : vector<1x256xf32> to vector<8x256xf32>
    %197 = arith.mulf %193, %196 : vector<8x256xf32>
    %198 = arith.addf %191, %197 : vector<8x256xf32>
    %199 = vector.extract_strided_slice %148 {offsets = [64, 0], sizes = [8, 256], strides = [1, 1]} : vector<72x256xf32> to vector<8x256xf32>
    %c239_i32_105 = arith.constant 239 : i32
    %200 = tpu.dynamic_rotate %199 by %c239_i32_105 dim 1 : vector<8x256xf32>, i32 -> vector<8x256xf32>
    %c8_106 = arith.constant 8 : index
    %c0_107 = arith.constant 0 : index
    %c0_108 = arith.constant 0 : index
    %201 = vector.load %arg3[%c8_106, %c0_107, %c0_108] : memref<9x1x256xf32, #tpu.memory_space<vmem>>, vector<1x1x256xf32>
    %202 = vector.shape_cast %201 : vector<1x1x256xf32> to vector<1x256xf32>
    %203 = vector.broadcast %202 : vector<1x256xf32> to vector<8x256xf32>
    %204 = arith.mulf %200, %203 : vector<8x256xf32>
    %205 = arith.addf %198, %204 : vector<8x256xf32>
    %c2_109 = arith.constant 2 : index
    %c0_110 = arith.constant 0 : index
    %c0_111 = arith.constant 0 : index
    %206 = vector.load %arg7[%c2_109, %c0_110, %c0_111] : memref<7x8x1xf32, #tpu.memory_space<vmem>>, vector<1x8x1xf32>
    %207 = vector.shape_cast %206 : vector<1x8x1xf32> to vector<8x1xf32>
    %208 = vector.broadcast %207 : vector<8x1xf32> to vector<8x256xf32>
    %209 = arith.addf %205, %208 : vector<8x256xf32>
    %cst_112 = arith.constant 0.000000e+00 : f32
    %210 = vector.broadcast %cst_112 : f32 to vector<8x256xf32>
    %211 = arith.cmpf oge, %209, %210 : vector<8x256xf32>
    %cst_113 = arith.constant 0.00999999977 : f32
    %212 = vector.broadcast %cst_113 : f32 to vector<8x256xf32>
    %213 = arith.mulf %212, %209 : vector<8x256xf32>
    %214 = arith.select %211, %209, %213 : vector<8x256xi1>, vector<8x256xf32>
    %215 = arith.truncf %214 : vector<8x256xf32> to vector<8x256xbf16>
    %c2_114 = arith.constant 2 : index
    %c0_115 = arith.constant 0 : index
    %c0_116 = arith.constant 0 : index
    %216 = vector.load %arg6[%c2_114, %c0_115, %c0_116] : memref<6x72x8xbf16, #tpu.memory_space<vmem>>, vector<1x72x8xbf16>
    %217 = vector.shape_cast %216 : vector<1x72x8xbf16> to vector<72x8xbf16>
    %cst_117 = arith.constant dense<0.000000e+00> : vector<72x256xf32>
    %218 = tpu.matmul %217, %215, %cst_117 {dimension_numbers = #tpu.dot_dimension_numbers<[1], [0], [0], [1], [0, 0, 1, 1], [], []>} : vector<72x8xbf16>, vector<8x256xbf16>, vector<72x256xf32> -> vector<72x256xf32>
    %219 = vector.extract_strided_slice %218 {offsets = [32, 0], sizes = [8, 256], strides = [1, 1]} : vector<72x256xf32> to vector<8x256xf32>
    %220 = vector.extract_strided_slice %218 {offsets = [0, 0], sizes = [8, 256], strides = [1, 1]} : vector<72x256xf32> to vector<8x256xf32>
    %c17_i32_118 = arith.constant 17 : i32
    %221 = tpu.dynamic_rotate %220 by %c17_i32_118 dim 1 : vector<8x256xf32>, i32 -> vector<8x256xf32>
    %c0_119 = arith.constant 0 : index
    %c0_120 = arith.constant 0 : index
    %c0_121 = arith.constant 0 : index
    %222 = vector.load %arg3[%c0_119, %c0_120, %c0_121] : memref<9x1x256xf32, #tpu.memory_space<vmem>>, vector<1x1x256xf32>
    %223 = vector.shape_cast %222 : vector<1x1x256xf32> to vector<1x256xf32>
    %224 = vector.broadcast %223 : vector<1x256xf32> to vector<8x256xf32>
    %225 = arith.mulf %221, %224 : vector<8x256xf32>
    %226 = arith.addf %219, %225 : vector<8x256xf32>
    %227 = vector.extract_strided_slice %218 {offsets = [8, 0], sizes = [8, 256], strides = [1, 1]} : vector<72x256xf32> to vector<8x256xf32>
    %c16_i32_122 = arith.constant 16 : i32
    %228 = tpu.dynamic_rotate %227 by %c16_i32_122 dim 1 : vector<8x256xf32>, i32 -> vector<8x256xf32>
    %c1_123 = arith.constant 1 : index
    %c0_124 = arith.constant 0 : index
    %c0_125 = arith.constant 0 : index
    %229 = vector.load %arg3[%c1_123, %c0_124, %c0_125] : memref<9x1x256xf32, #tpu.memory_space<vmem>>, vector<1x1x256xf32>
    %230 = vector.shape_cast %229 : vector<1x1x256xf32> to vector<1x256xf32>
    %231 = vector.broadcast %230 : vector<1x256xf32> to vector<8x256xf32>
    %232 = arith.mulf %228, %231 : vector<8x256xf32>
    %233 = arith.addf %226, %232 : vector<8x256xf32>
    %234 = vector.extract_strided_slice %218 {offsets = [16, 0], sizes = [8, 256], strides = [1, 1]} : vector<72x256xf32> to vector<8x256xf32>
    %c15_i32_126 = arith.constant 15 : i32
    %235 = tpu.dynamic_rotate %234 by %c15_i32_126 dim 1 : vector<8x256xf32>, i32 -> vector<8x256xf32>
    %c2_127 = arith.constant 2 : index
    %c0_128 = arith.constant 0 : index
    %c0_129 = arith.constant 0 : index
    %236 = vector.load %arg3[%c2_127, %c0_128, %c0_129] : memref<9x1x256xf32, #tpu.memory_space<vmem>>, vector<1x1x256xf32>
    %237 = vector.shape_cast %236 : vector<1x1x256xf32> to vector<1x256xf32>
    %238 = vector.broadcast %237 : vector<1x256xf32> to vector<8x256xf32>
    %239 = arith.mulf %235, %238 : vector<8x256xf32>
    %240 = arith.addf %233, %239 : vector<8x256xf32>
    %241 = vector.extract_strided_slice %218 {offsets = [24, 0], sizes = [8, 256], strides = [1, 1]} : vector<72x256xf32> to vector<8x256xf32>
    %c1_i32_130 = arith.constant 1 : i32
    %242 = tpu.dynamic_rotate %241 by %c1_i32_130 dim 1 : vector<8x256xf32>, i32 -> vector<8x256xf32>
    %c3_131 = arith.constant 3 : index
    %c0_132 = arith.constant 0 : index
    %c0_133 = arith.constant 0 : index
    %243 = vector.load %arg3[%c3_131, %c0_132, %c0_133] : memref<9x1x256xf32, #tpu.memory_space<vmem>>, vector<1x1x256xf32>
    %244 = vector.shape_cast %243 : vector<1x1x256xf32> to vector<1x256xf32>
    %245 = vector.broadcast %244 : vector<1x256xf32> to vector<8x256xf32>
    %246 = arith.mulf %242, %245 : vector<8x256xf32>
    %247 = arith.addf %240, %246 : vector<8x256xf32>
    %248 = vector.extract_strided_slice %218 {offsets = [40, 0], sizes = [8, 256], strides = [1, 1]} : vector<72x256xf32> to vector<8x256xf32>
    %c255_i32_134 = arith.constant 255 : i32
    %249 = tpu.dynamic_rotate %248 by %c255_i32_134 dim 1 : vector<8x256xf32>, i32 -> vector<8x256xf32>
    %c5_135 = arith.constant 5 : index
    %c0_136 = arith.constant 0 : index
    %c0_137 = arith.constant 0 : index
    %250 = vector.load %arg3[%c5_135, %c0_136, %c0_137] : memref<9x1x256xf32, #tpu.memory_space<vmem>>, vector<1x1x256xf32>
    %251 = vector.shape_cast %250 : vector<1x1x256xf32> to vector<1x256xf32>
    %252 = vector.broadcast %251 : vector<1x256xf32> to vector<8x256xf32>
    %253 = arith.mulf %249, %252 : vector<8x256xf32>
    %254 = arith.addf %247, %253 : vector<8x256xf32>
    %255 = vector.extract_strided_slice %218 {offsets = [48, 0], sizes = [8, 256], strides = [1, 1]} : vector<72x256xf32> to vector<8x256xf32>
    %c241_i32_138 = arith.constant 241 : i32
    %256 = tpu.dynamic_rotate %255 by %c241_i32_138 dim 1 : vector<8x256xf32>, i32 -> vector<8x256xf32>
    %c6_139 = arith.constant 6 : index
    %c0_140 = arith.constant 0 : index
    %c0_141 = arith.constant 0 : index
    %257 = vector.load %arg3[%c6_139, %c0_140, %c0_141] : memref<9x1x256xf32, #tpu.memory_space<vmem>>, vector<1x1x256xf32>
    %258 = vector.shape_cast %257 : vector<1x1x256xf32> to vector<1x256xf32>
    %259 = vector.broadcast %258 : vector<1x256xf32> to vector<8x256xf32>
    %260 = arith.mulf %256, %259 : vector<8x256xf32>
    %261 = arith.addf %254, %260 : vector<8x256xf32>
    %262 = vector.extract_strided_slice %218 {offsets = [56, 0], sizes = [8, 256], strides = [1, 1]} : vector<72x256xf32> to vector<8x256xf32>
    %c240_i32_142 = arith.constant 240 : i32
    %263 = tpu.dynamic_rotate %262 by %c240_i32_142 dim 1 : vector<8x256xf32>, i32 -> vector<8x256xf32>
    %c7_143 = arith.constant 7 : index
    %c0_144 = arith.constant 0 : index
    %c0_145 = arith.constant 0 : index
    %264 = vector.load %arg3[%c7_143, %c0_144, %c0_145] : memref<9x1x256xf32, #tpu.memory_space<vmem>>, vector<1x1x256xf32>
    %265 = vector.shape_cast %264 : vector<1x1x256xf32> to vector<1x256xf32>
    %266 = vector.broadcast %265 : vector<1x256xf32> to vector<8x256xf32>
    %267 = arith.mulf %263, %266 : vector<8x256xf32>
    %268 = arith.addf %261, %267 : vector<8x256xf32>
    %269 = vector.extract_strided_slice %218 {offsets = [64, 0], sizes = [8, 256], strides = [1, 1]} : vector<72x256xf32> to vector<8x256xf32>
    %c239_i32_146 = arith.constant 239 : i32
    %270 = tpu.dynamic_rotate %269 by %c239_i32_146 dim 1 : vector<8x256xf32>, i32 -> vector<8x256xf32>
    %c8_147 = arith.constant 8 : index
    %c0_148 = arith.constant 0 : index
    %c0_149 = arith.constant 0 : index
    %271 = vector.load %arg3[%c8_147, %c0_148, %c0_149] : memref<9x1x256xf32, #tpu.memory_space<vmem>>, vector<1x1x256xf32>
    %272 = vector.shape_cast %271 : vector<1x1x256xf32> to vector<1x256xf32>
    %273 = vector.broadcast %272 : vector<1x256xf32> to vector<8x256xf32>
    %274 = arith.mulf %270, %273 : vector<8x256xf32>
    %275 = arith.addf %268, %274 : vector<8x256xf32>
    %c3_150 = arith.constant 3 : index
    %c0_151 = arith.constant 0 : index
    %c0_152 = arith.constant 0 : index
    %276 = vector.load %arg7[%c3_150, %c0_151, %c0_152] : memref<7x8x1xf32, #tpu.memory_space<vmem>>, vector<1x8x1xf32>
    %277 = vector.shape_cast %276 : vector<1x8x1xf32> to vector<8x1xf32>
    %278 = vector.broadcast %277 : vector<8x1xf32> to vector<8x256xf32>
    %279 = arith.addf %275, %278 : vector<8x256xf32>
    %cst_153 = arith.constant 0.000000e+00 : f32
    %280 = vector.broadcast %cst_153 : f32 to vector<8x256xf32>
    %281 = arith.cmpf oge, %279, %280 : vector<8x256xf32>
    %cst_154 = arith.constant 0.00999999977 : f32
    %282 = vector.broadcast %cst_154 : f32 to vector<8x256xf32>
    %283 = arith.mulf %282, %279 : vector<8x256xf32>
    %284 = arith.select %281, %279, %283 : vector<8x256xi1>, vector<8x256xf32>
    %285 = arith.truncf %284 : vector<8x256xf32> to vector<8x256xbf16>
    %c3_155 = arith.constant 3 : index
    %c0_156 = arith.constant 0 : index
    %c0_157 = arith.constant 0 : index
    %286 = vector.load %arg6[%c3_155, %c0_156, %c0_157] : memref<6x72x8xbf16, #tpu.memory_space<vmem>>, vector<1x72x8xbf16>
    %287 = vector.shape_cast %286 : vector<1x72x8xbf16> to vector<72x8xbf16>
    %cst_158 = arith.constant dense<0.000000e+00> : vector<72x256xf32>
    %288 = tpu.matmul %287, %285, %cst_158 {dimension_numbers = #tpu.dot_dimension_numbers<[1], [0], [0], [1], [0, 0, 1, 1], [], []>} : vector<72x8xbf16>, vector<8x256xbf16>, vector<72x256xf32> -> vector<72x256xf32>
    %289 = vector.extract_strided_slice %288 {offsets = [32, 0], sizes = [8, 256], strides = [1, 1]} : vector<72x256xf32> to vector<8x256xf32>
    %290 = vector.extract_strided_slice %288 {offsets = [0, 0], sizes = [8, 256], strides = [1, 1]} : vector<72x256xf32> to vector<8x256xf32>
    %c17_i32_159 = arith.constant 17 : i32
    %291 = tpu.dynamic_rotate %290 by %c17_i32_159 dim 1 : vector<8x256xf32>, i32 -> vector<8x256xf32>
    %c0_160 = arith.constant 0 : index
    %c0_161 = arith.constant 0 : index
    %c0_162 = arith.constant 0 : index
    %292 = vector.load %arg3[%c0_160, %c0_161, %c0_162] : memref<9x1x256xf32, #tpu.memory_space<vmem>>, vector<1x1x256xf32>
    %293 = vector.shape_cast %292 : vector<1x1x256xf32> to vector<1x256xf32>
    %294 = vector.broadcast %293 : vector<1x256xf32> to vector<8x256xf32>
    %295 = arith.mulf %291, %294 : vector<8x256xf32>
    %296 = arith.addf %289, %295 : vector<8x256xf32>
    %297 = vector.extract_strided_slice %288 {offsets = [8, 0], sizes = [8, 256], strides = [1, 1]} : vector<72x256xf32> to vector<8x256xf32>
    %c16_i32_163 = arith.constant 16 : i32
    %298 = tpu.dynamic_rotate %297 by %c16_i32_163 dim 1 : vector<8x256xf32>, i32 -> vector<8x256xf32>
    %c1_164 = arith.constant 1 : index
    %c0_165 = arith.constant 0 : index
    %c0_166 = arith.constant 0 : index
    %299 = vector.load %arg3[%c1_164, %c0_165, %c0_166] : memref<9x1x256xf32, #tpu.memory_space<vmem>>, vector<1x1x256xf32>
    %300 = vector.shape_cast %299 : vector<1x1x256xf32> to vector<1x256xf32>
    %301 = vector.broadcast %300 : vector<1x256xf32> to vector<8x256xf32>
    %302 = arith.mulf %298, %301 : vector<8x256xf32>
    %303 = arith.addf %296, %302 : vector<8x256xf32>
    %304 = vector.extract_strided_slice %288 {offsets = [16, 0], sizes = [8, 256], strides = [1, 1]} : vector<72x256xf32> to vector<8x256xf32>
    %c15_i32_167 = arith.constant 15 : i32
    %305 = tpu.dynamic_rotate %304 by %c15_i32_167 dim 1 : vector<8x256xf32>, i32 -> vector<8x256xf32>
    %c2_168 = arith.constant 2 : index
    %c0_169 = arith.constant 0 : index
    %c0_170 = arith.constant 0 : index
    %306 = vector.load %arg3[%c2_168, %c0_169, %c0_170] : memref<9x1x256xf32, #tpu.memory_space<vmem>>, vector<1x1x256xf32>
    %307 = vector.shape_cast %306 : vector<1x1x256xf32> to vector<1x256xf32>
    %308 = vector.broadcast %307 : vector<1x256xf32> to vector<8x256xf32>
    %309 = arith.mulf %305, %308 : vector<8x256xf32>
    %310 = arith.addf %303, %309 : vector<8x256xf32>
    %311 = vector.extract_strided_slice %288 {offsets = [24, 0], sizes = [8, 256], strides = [1, 1]} : vector<72x256xf32> to vector<8x256xf32>
    %c1_i32_171 = arith.constant 1 : i32
    %312 = tpu.dynamic_rotate %311 by %c1_i32_171 dim 1 : vector<8x256xf32>, i32 -> vector<8x256xf32>
    %c3_172 = arith.constant 3 : index
    %c0_173 = arith.constant 0 : index
    %c0_174 = arith.constant 0 : index
    %313 = vector.load %arg3[%c3_172, %c0_173, %c0_174] : memref<9x1x256xf32, #tpu.memory_space<vmem>>, vector<1x1x256xf32>
    %314 = vector.shape_cast %313 : vector<1x1x256xf32> to vector<1x256xf32>
    %315 = vector.broadcast %314 : vector<1x256xf32> to vector<8x256xf32>
    %316 = arith.mulf %312, %315 : vector<8x256xf32>
    %317 = arith.addf %310, %316 : vector<8x256xf32>
    %318 = vector.extract_strided_slice %288 {offsets = [40, 0], sizes = [8, 256], strides = [1, 1]} : vector<72x256xf32> to vector<8x256xf32>
    %c255_i32_175 = arith.constant 255 : i32
    %319 = tpu.dynamic_rotate %318 by %c255_i32_175 dim 1 : vector<8x256xf32>, i32 -> vector<8x256xf32>
    %c5_176 = arith.constant 5 : index
    %c0_177 = arith.constant 0 : index
    %c0_178 = arith.constant 0 : index
    %320 = vector.load %arg3[%c5_176, %c0_177, %c0_178] : memref<9x1x256xf32, #tpu.memory_space<vmem>>, vector<1x1x256xf32>
    %321 = vector.shape_cast %320 : vector<1x1x256xf32> to vector<1x256xf32>
    %322 = vector.broadcast %321 : vector<1x256xf32> to vector<8x256xf32>
    %323 = arith.mulf %319, %322 : vector<8x256xf32>
    %324 = arith.addf %317, %323 : vector<8x256xf32>
    %325 = vector.extract_strided_slice %288 {offsets = [48, 0], sizes = [8, 256], strides = [1, 1]} : vector<72x256xf32> to vector<8x256xf32>
    %c241_i32_179 = arith.constant 241 : i32
    %326 = tpu.dynamic_rotate %325 by %c241_i32_179 dim 1 : vector<8x256xf32>, i32 -> vector<8x256xf32>
    %c6_180 = arith.constant 6 : index
    %c0_181 = arith.constant 0 : index
    %c0_182 = arith.constant 0 : index
    %327 = vector.load %arg3[%c6_180, %c0_181, %c0_182] : memref<9x1x256xf32, #tpu.memory_space<vmem>>, vector<1x1x256xf32>
    %328 = vector.shape_cast %327 : vector<1x1x256xf32> to vector<1x256xf32>
    %329 = vector.broadcast %328 : vector<1x256xf32> to vector<8x256xf32>
    %330 = arith.mulf %326, %329 : vector<8x256xf32>
    %331 = arith.addf %324, %330 : vector<8x256xf32>
    %332 = vector.extract_strided_slice %288 {offsets = [56, 0], sizes = [8, 256], strides = [1, 1]} : vector<72x256xf32> to vector<8x256xf32>
    %c240_i32_183 = arith.constant 240 : i32
    %333 = tpu.dynamic_rotate %332 by %c240_i32_183 dim 1 : vector<8x256xf32>, i32 -> vector<8x256xf32>
    %c7_184 = arith.constant 7 : index
    %c0_185 = arith.constant 0 : index
    %c0_186 = arith.constant 0 : index
    %334 = vector.load %arg3[%c7_184, %c0_185, %c0_186] : memref<9x1x256xf32, #tpu.memory_space<vmem>>, vector<1x1x256xf32>
    %335 = vector.shape_cast %334 : vector<1x1x256xf32> to vector<1x256xf32>
    %336 = vector.broadcast %335 : vector<1x256xf32> to vector<8x256xf32>
    %337 = arith.mulf %333, %336 : vector<8x256xf32>
    %338 = arith.addf %331, %337 : vector<8x256xf32>
    %339 = vector.extract_strided_slice %288 {offsets = [64, 0], sizes = [8, 256], strides = [1, 1]} : vector<72x256xf32> to vector<8x256xf32>
    %c239_i32_187 = arith.constant 239 : i32
    %340 = tpu.dynamic_rotate %339 by %c239_i32_187 dim 1 : vector<8x256xf32>, i32 -> vector<8x256xf32>
    %c8_188 = arith.constant 8 : index
    %c0_189 = arith.constant 0 : index
    %c0_190 = arith.constant 0 : index
    %341 = vector.load %arg3[%c8_188, %c0_189, %c0_190] : memref<9x1x256xf32, #tpu.memory_space<vmem>>, vector<1x1x256xf32>
    %342 = vector.shape_cast %341 : vector<1x1x256xf32> to vector<1x256xf32>
    %343 = vector.broadcast %342 : vector<1x256xf32> to vector<8x256xf32>
    %344 = arith.mulf %340, %343 : vector<8x256xf32>
    %345 = arith.addf %338, %344 : vector<8x256xf32>
    %c4 = arith.constant 4 : index
    %c0_191 = arith.constant 0 : index
    %c0_192 = arith.constant 0 : index
    %346 = vector.load %arg7[%c4, %c0_191, %c0_192] : memref<7x8x1xf32, #tpu.memory_space<vmem>>, vector<1x8x1xf32>
    %347 = vector.shape_cast %346 : vector<1x8x1xf32> to vector<8x1xf32>
    %348 = vector.broadcast %347 : vector<8x1xf32> to vector<8x256xf32>
    %349 = arith.addf %345, %348 : vector<8x256xf32>
    %cst_193 = arith.constant 0.000000e+00 : f32
    %350 = vector.broadcast %cst_193 : f32 to vector<8x256xf32>
    %351 = arith.cmpf oge, %349, %350 : vector<8x256xf32>
    %cst_194 = arith.constant 0.00999999977 : f32
    %352 = vector.broadcast %cst_194 : f32 to vector<8x256xf32>
    %353 = arith.mulf %352, %349 : vector<8x256xf32>
    %354 = arith.select %351, %349, %353 : vector<8x256xi1>, vector<8x256xf32>
    %355 = arith.truncf %354 : vector<8x256xf32> to vector<8x256xbf16>
    %c4_195 = arith.constant 4 : index
    %c0_196 = arith.constant 0 : index
    %c0_197 = arith.constant 0 : index
    %356 = vector.load %arg6[%c4_195, %c0_196, %c0_197] : memref<6x72x8xbf16, #tpu.memory_space<vmem>>, vector<1x72x8xbf16>
    %357 = vector.shape_cast %356 : vector<1x72x8xbf16> to vector<72x8xbf16>
    %cst_198 = arith.constant dense<0.000000e+00> : vector<72x256xf32>
    %358 = tpu.matmul %357, %355, %cst_198 {dimension_numbers = #tpu.dot_dimension_numbers<[1], [0], [0], [1], [0, 0, 1, 1], [], []>} : vector<72x8xbf16>, vector<8x256xbf16>, vector<72x256xf32> -> vector<72x256xf32>
    %359 = vector.extract_strided_slice %358 {offsets = [32, 0], sizes = [8, 256], strides = [1, 1]} : vector<72x256xf32> to vector<8x256xf32>
    %360 = vector.extract_strided_slice %358 {offsets = [0, 0], sizes = [8, 256], strides = [1, 1]} : vector<72x256xf32> to vector<8x256xf32>
    %c17_i32_199 = arith.constant 17 : i32
    %361 = tpu.dynamic_rotate %360 by %c17_i32_199 dim 1 : vector<8x256xf32>, i32 -> vector<8x256xf32>
    %c0_200 = arith.constant 0 : index
    %c0_201 = arith.constant 0 : index
    %c0_202 = arith.constant 0 : index
    %362 = vector.load %arg3[%c0_200, %c0_201, %c0_202] : memref<9x1x256xf32, #tpu.memory_space<vmem>>, vector<1x1x256xf32>
    %363 = vector.shape_cast %362 : vector<1x1x256xf32> to vector<1x256xf32>
    %364 = vector.broadcast %363 : vector<1x256xf32> to vector<8x256xf32>
    %365 = arith.mulf %361, %364 : vector<8x256xf32>
    %366 = arith.addf %359, %365 : vector<8x256xf32>
    %367 = vector.extract_strided_slice %358 {offsets = [8, 0], sizes = [8, 256], strides = [1, 1]} : vector<72x256xf32> to vector<8x256xf32>
    %c16_i32_203 = arith.constant 16 : i32
    %368 = tpu.dynamic_rotate %367 by %c16_i32_203 dim 1 : vector<8x256xf32>, i32 -> vector<8x256xf32>
    %c1_204 = arith.constant 1 : index
    %c0_205 = arith.constant 0 : index
    %c0_206 = arith.constant 0 : index
    %369 = vector.load %arg3[%c1_204, %c0_205, %c0_206] : memref<9x1x256xf32, #tpu.memory_space<vmem>>, vector<1x1x256xf32>
    %370 = vector.shape_cast %369 : vector<1x1x256xf32> to vector<1x256xf32>
    %371 = vector.broadcast %370 : vector<1x256xf32> to vector<8x256xf32>
    %372 = arith.mulf %368, %371 : vector<8x256xf32>
    %373 = arith.addf %366, %372 : vector<8x256xf32>
    %374 = vector.extract_strided_slice %358 {offsets = [16, 0], sizes = [8, 256], strides = [1, 1]} : vector<72x256xf32> to vector<8x256xf32>
    %c15_i32_207 = arith.constant 15 : i32
    %375 = tpu.dynamic_rotate %374 by %c15_i32_207 dim 1 : vector<8x256xf32>, i32 -> vector<8x256xf32>
    %c2_208 = arith.constant 2 : index
    %c0_209 = arith.constant 0 : index
    %c0_210 = arith.constant 0 : index
    %376 = vector.load %arg3[%c2_208, %c0_209, %c0_210] : memref<9x1x256xf32, #tpu.memory_space<vmem>>, vector<1x1x256xf32>
    %377 = vector.shape_cast %376 : vector<1x1x256xf32> to vector<1x256xf32>
    %378 = vector.broadcast %377 : vector<1x256xf32> to vector<8x256xf32>
    %379 = arith.mulf %375, %378 : vector<8x256xf32>
    %380 = arith.addf %373, %379 : vector<8x256xf32>
    %381 = vector.extract_strided_slice %358 {offsets = [24, 0], sizes = [8, 256], strides = [1, 1]} : vector<72x256xf32> to vector<8x256xf32>
    %c1_i32_211 = arith.constant 1 : i32
    %382 = tpu.dynamic_rotate %381 by %c1_i32_211 dim 1 : vector<8x256xf32>, i32 -> vector<8x256xf32>
    %c3_212 = arith.constant 3 : index
    %c0_213 = arith.constant 0 : index
    %c0_214 = arith.constant 0 : index
    %383 = vector.load %arg3[%c3_212, %c0_213, %c0_214] : memref<9x1x256xf32, #tpu.memory_space<vmem>>, vector<1x1x256xf32>
    %384 = vector.shape_cast %383 : vector<1x1x256xf32> to vector<1x256xf32>
    %385 = vector.broadcast %384 : vector<1x256xf32> to vector<8x256xf32>
    %386 = arith.mulf %382, %385 : vector<8x256xf32>
    %387 = arith.addf %380, %386 : vector<8x256xf32>
    %388 = vector.extract_strided_slice %358 {offsets = [40, 0], sizes = [8, 256], strides = [1, 1]} : vector<72x256xf32> to vector<8x256xf32>
    %c255_i32_215 = arith.constant 255 : i32
    %389 = tpu.dynamic_rotate %388 by %c255_i32_215 dim 1 : vector<8x256xf32>, i32 -> vector<8x256xf32>
    %c5_216 = arith.constant 5 : index
    %c0_217 = arith.constant 0 : index
    %c0_218 = arith.constant 0 : index
    %390 = vector.load %arg3[%c5_216, %c0_217, %c0_218] : memref<9x1x256xf32, #tpu.memory_space<vmem>>, vector<1x1x256xf32>
    %391 = vector.shape_cast %390 : vector<1x1x256xf32> to vector<1x256xf32>
    %392 = vector.broadcast %391 : vector<1x256xf32> to vector<8x256xf32>
    %393 = arith.mulf %389, %392 : vector<8x256xf32>
    %394 = arith.addf %387, %393 : vector<8x256xf32>
    %395 = vector.extract_strided_slice %358 {offsets = [48, 0], sizes = [8, 256], strides = [1, 1]} : vector<72x256xf32> to vector<8x256xf32>
    %c241_i32_219 = arith.constant 241 : i32
    %396 = tpu.dynamic_rotate %395 by %c241_i32_219 dim 1 : vector<8x256xf32>, i32 -> vector<8x256xf32>
    %c6_220 = arith.constant 6 : index
    %c0_221 = arith.constant 0 : index
    %c0_222 = arith.constant 0 : index
    %397 = vector.load %arg3[%c6_220, %c0_221, %c0_222] : memref<9x1x256xf32, #tpu.memory_space<vmem>>, vector<1x1x256xf32>
    %398 = vector.shape_cast %397 : vector<1x1x256xf32> to vector<1x256xf32>
    %399 = vector.broadcast %398 : vector<1x256xf32> to vector<8x256xf32>
    %400 = arith.mulf %396, %399 : vector<8x256xf32>
    %401 = arith.addf %394, %400 : vector<8x256xf32>
    %402 = vector.extract_strided_slice %358 {offsets = [56, 0], sizes = [8, 256], strides = [1, 1]} : vector<72x256xf32> to vector<8x256xf32>
    %c240_i32_223 = arith.constant 240 : i32
    %403 = tpu.dynamic_rotate %402 by %c240_i32_223 dim 1 : vector<8x256xf32>, i32 -> vector<8x256xf32>
    %c7_224 = arith.constant 7 : index
    %c0_225 = arith.constant 0 : index
    %c0_226 = arith.constant 0 : index
    %404 = vector.load %arg3[%c7_224, %c0_225, %c0_226] : memref<9x1x256xf32, #tpu.memory_space<vmem>>, vector<1x1x256xf32>
    %405 = vector.shape_cast %404 : vector<1x1x256xf32> to vector<1x256xf32>
    %406 = vector.broadcast %405 : vector<1x256xf32> to vector<8x256xf32>
    %407 = arith.mulf %403, %406 : vector<8x256xf32>
    %408 = arith.addf %401, %407 : vector<8x256xf32>
    %409 = vector.extract_strided_slice %358 {offsets = [64, 0], sizes = [8, 256], strides = [1, 1]} : vector<72x256xf32> to vector<8x256xf32>
    %c239_i32_227 = arith.constant 239 : i32
    %410 = tpu.dynamic_rotate %409 by %c239_i32_227 dim 1 : vector<8x256xf32>, i32 -> vector<8x256xf32>
    %c8_228 = arith.constant 8 : index
    %c0_229 = arith.constant 0 : index
    %c0_230 = arith.constant 0 : index
    %411 = vector.load %arg3[%c8_228, %c0_229, %c0_230] : memref<9x1x256xf32, #tpu.memory_space<vmem>>, vector<1x1x256xf32>
    %412 = vector.shape_cast %411 : vector<1x1x256xf32> to vector<1x256xf32>
    %413 = vector.broadcast %412 : vector<1x256xf32> to vector<8x256xf32>
    %414 = arith.mulf %410, %413 : vector<8x256xf32>
    %415 = arith.addf %408, %414 : vector<8x256xf32>
    %c5_231 = arith.constant 5 : index
    %c0_232 = arith.constant 0 : index
    %c0_233 = arith.constant 0 : index
    %416 = vector.load %arg7[%c5_231, %c0_232, %c0_233] : memref<7x8x1xf32, #tpu.memory_space<vmem>>, vector<1x8x1xf32>
    %417 = vector.shape_cast %416 : vector<1x8x1xf32> to vector<8x1xf32>
    %418 = vector.broadcast %417 : vector<8x1xf32> to vector<8x256xf32>
    %419 = arith.addf %415, %418 : vector<8x256xf32>
    %420 = arith.addf %144, %419 : vector<8x256xf32>
    %421 = arith.truncf %420 : vector<8x256xf32> to vector<8x256xbf16>
    %c5_234 = arith.constant 5 : index
    %c0_235 = arith.constant 0 : index
    %c0_236 = arith.constant 0 : index
    %422 = vector.load %arg6[%c5_234, %c0_235, %c0_236] : memref<6x72x8xbf16, #tpu.memory_space<vmem>>, vector<1x72x8xbf16>
    %423 = vector.shape_cast %422 : vector<1x72x8xbf16> to vector<72x8xbf16>
    %cst_237 = arith.constant dense<0.000000e+00> : vector<72x256xf32>
    %424 = tpu.matmul %423, %421, %cst_237 {dimension_numbers = #tpu.dot_dimension_numbers<[1], [0], [0], [1], [0, 0, 1, 1], [], []>} : vector<72x8xbf16>, vector<8x256xbf16>, vector<72x256xf32> -> vector<72x256xf32>
    %425 = vector.extract_strided_slice %424 {offsets = [32, 0], sizes = [8, 256], strides = [1, 1]} : vector<72x256xf32> to vector<8x256xf32>
    %426 = vector.extract_strided_slice %424 {offsets = [0, 0], sizes = [8, 256], strides = [1, 1]} : vector<72x256xf32> to vector<8x256xf32>
    %c17_i32_238 = arith.constant 17 : i32
    %427 = tpu.dynamic_rotate %426 by %c17_i32_238 dim 1 : vector<8x256xf32>, i32 -> vector<8x256xf32>
    %c0_239 = arith.constant 0 : index
    %c0_240 = arith.constant 0 : index
    %c0_241 = arith.constant 0 : index
    %428 = vector.load %arg3[%c0_239, %c0_240, %c0_241] : memref<9x1x256xf32, #tpu.memory_space<vmem>>, vector<1x1x256xf32>
    %429 = vector.shape_cast %428 : vector<1x1x256xf32> to vector<1x256xf32>
    %430 = vector.broadcast %429 : vector<1x256xf32> to vector<8x256xf32>
    %431 = arith.mulf %427, %430 : vector<8x256xf32>
    %432 = arith.addf %425, %431 : vector<8x256xf32>
    %433 = vector.extract_strided_slice %424 {offsets = [8, 0], sizes = [8, 256], strides = [1, 1]} : vector<72x256xf32> to vector<8x256xf32>
    %c16_i32_242 = arith.constant 16 : i32
    %434 = tpu.dynamic_rotate %433 by %c16_i32_242 dim 1 : vector<8x256xf32>, i32 -> vector<8x256xf32>
    %c1_243 = arith.constant 1 : index
    %c0_244 = arith.constant 0 : index
    %c0_245 = arith.constant 0 : index
    %435 = vector.load %arg3[%c1_243, %c0_244, %c0_245] : memref<9x1x256xf32, #tpu.memory_space<vmem>>, vector<1x1x256xf32>
    %436 = vector.shape_cast %435 : vector<1x1x256xf32> to vector<1x256xf32>
    %437 = vector.broadcast %436 : vector<1x256xf32> to vector<8x256xf32>
    %438 = arith.mulf %434, %437 : vector<8x256xf32>
    %439 = arith.addf %432, %438 : vector<8x256xf32>
    %440 = vector.extract_strided_slice %424 {offsets = [16, 0], sizes = [8, 256], strides = [1, 1]} : vector<72x256xf32> to vector<8x256xf32>
    %c15_i32_246 = arith.constant 15 : i32
    %441 = tpu.dynamic_rotate %440 by %c15_i32_246 dim 1 : vector<8x256xf32>, i32 -> vector<8x256xf32>
    %c2_247 = arith.constant 2 : index
    %c0_248 = arith.constant 0 : index
    %c0_249 = arith.constant 0 : index
    %442 = vector.load %arg3[%c2_247, %c0_248, %c0_249] : memref<9x1x256xf32, #tpu.memory_space<vmem>>, vector<1x1x256xf32>
    %443 = vector.shape_cast %442 : vector<1x1x256xf32> to vector<1x256xf32>
    %444 = vector.broadcast %443 : vector<1x256xf32> to vector<8x256xf32>
    %445 = arith.mulf %441, %444 : vector<8x256xf32>
    %446 = arith.addf %439, %445 : vector<8x256xf32>
    %447 = vector.extract_strided_slice %424 {offsets = [24, 0], sizes = [8, 256], strides = [1, 1]} : vector<72x256xf32> to vector<8x256xf32>
    %c1_i32_250 = arith.constant 1 : i32
    %448 = tpu.dynamic_rotate %447 by %c1_i32_250 dim 1 : vector<8x256xf32>, i32 -> vector<8x256xf32>
    %c3_251 = arith.constant 3 : index
    %c0_252 = arith.constant 0 : index
    %c0_253 = arith.constant 0 : index
    %449 = vector.load %arg3[%c3_251, %c0_252, %c0_253] : memref<9x1x256xf32, #tpu.memory_space<vmem>>, vector<1x1x256xf32>
    %450 = vector.shape_cast %449 : vector<1x1x256xf32> to vector<1x256xf32>
    %451 = vector.broadcast %450 : vector<1x256xf32> to vector<8x256xf32>
    %452 = arith.mulf %448, %451 : vector<8x256xf32>
    %453 = arith.addf %446, %452 : vector<8x256xf32>
    %454 = vector.extract_strided_slice %424 {offsets = [40, 0], sizes = [8, 256], strides = [1, 1]} : vector<72x256xf32> to vector<8x256xf32>
    %c255_i32_254 = arith.constant 255 : i32
    %455 = tpu.dynamic_rotate %454 by %c255_i32_254 dim 1 : vector<8x256xf32>, i32 -> vector<8x256xf32>
    %c5_255 = arith.constant 5 : index
    %c0_256 = arith.constant 0 : index
    %c0_257 = arith.constant 0 : index
    %456 = vector.load %arg3[%c5_255, %c0_256, %c0_257] : memref<9x1x256xf32, #tpu.memory_space<vmem>>, vector<1x1x256xf32>
    %457 = vector.shape_cast %456 : vector<1x1x256xf32> to vector<1x256xf32>
    %458 = vector.broadcast %457 : vector<1x256xf32> to vector<8x256xf32>
    %459 = arith.mulf %455, %458 : vector<8x256xf32>
    %460 = arith.addf %453, %459 : vector<8x256xf32>
    %461 = vector.extract_strided_slice %424 {offsets = [48, 0], sizes = [8, 256], strides = [1, 1]} : vector<72x256xf32> to vector<8x256xf32>
    %c241_i32_258 = arith.constant 241 : i32
    %462 = tpu.dynamic_rotate %461 by %c241_i32_258 dim 1 : vector<8x256xf32>, i32 -> vector<8x256xf32>
    %c6_259 = arith.constant 6 : index
    %c0_260 = arith.constant 0 : index
    %c0_261 = arith.constant 0 : index
    %463 = vector.load %arg3[%c6_259, %c0_260, %c0_261] : memref<9x1x256xf32, #tpu.memory_space<vmem>>, vector<1x1x256xf32>
    %464 = vector.shape_cast %463 : vector<1x1x256xf32> to vector<1x256xf32>
    %465 = vector.broadcast %464 : vector<1x256xf32> to vector<8x256xf32>
    %466 = arith.mulf %462, %465 : vector<8x256xf32>
    %467 = arith.addf %460, %466 : vector<8x256xf32>
    %468 = vector.extract_strided_slice %424 {offsets = [56, 0], sizes = [8, 256], strides = [1, 1]} : vector<72x256xf32> to vector<8x256xf32>
    %c240_i32_262 = arith.constant 240 : i32
    %469 = tpu.dynamic_rotate %468 by %c240_i32_262 dim 1 : vector<8x256xf32>, i32 -> vector<8x256xf32>
    %c7_263 = arith.constant 7 : index
    %c0_264 = arith.constant 0 : index
    %c0_265 = arith.constant 0 : index
    %470 = vector.load %arg3[%c7_263, %c0_264, %c0_265] : memref<9x1x256xf32, #tpu.memory_space<vmem>>, vector<1x1x256xf32>
    %471 = vector.shape_cast %470 : vector<1x1x256xf32> to vector<1x256xf32>
    %472 = vector.broadcast %471 : vector<1x256xf32> to vector<8x256xf32>
    %473 = arith.mulf %469, %472 : vector<8x256xf32>
    %474 = arith.addf %467, %473 : vector<8x256xf32>
    %475 = vector.extract_strided_slice %424 {offsets = [64, 0], sizes = [8, 256], strides = [1, 1]} : vector<72x256xf32> to vector<8x256xf32>
    %c239_i32_266 = arith.constant 239 : i32
    %476 = tpu.dynamic_rotate %475 by %c239_i32_266 dim 1 : vector<8x256xf32>, i32 -> vector<8x256xf32>
    %c8_267 = arith.constant 8 : index
    %c0_268 = arith.constant 0 : index
    %c0_269 = arith.constant 0 : index
    %477 = vector.load %arg3[%c8_267, %c0_268, %c0_269] : memref<9x1x256xf32, #tpu.memory_space<vmem>>, vector<1x1x256xf32>
    %478 = vector.shape_cast %477 : vector<1x1x256xf32> to vector<1x256xf32>
    %479 = vector.broadcast %478 : vector<1x256xf32> to vector<8x256xf32>
    %480 = arith.mulf %476, %479 : vector<8x256xf32>
    %481 = arith.addf %474, %480 : vector<8x256xf32>
    %c6_270 = arith.constant 6 : index
    %c0_271 = arith.constant 0 : index
    %c0_272 = arith.constant 0 : index
    %482 = vector.load %arg7[%c6_270, %c0_271, %c0_272] : memref<7x8x1xf32, #tpu.memory_space<vmem>>, vector<1x8x1xf32>
    %483 = vector.shape_cast %482 : vector<1x8x1xf32> to vector<8x1xf32>
    %484 = vector.broadcast %483 : vector<8x1xf32> to vector<8x256xf32>
    %485 = arith.addf %481, %484 : vector<8x256xf32>
    %cst_273 = arith.constant 0.000000e+00 : f32
    %486 = vector.broadcast %cst_273 : f32 to vector<8x256xf32>
    %487 = arith.cmpf oge, %485, %486 : vector<8x256xf32>
    %cst_274 = arith.constant 0.00999999977 : f32
    %488 = vector.broadcast %cst_274 : f32 to vector<8x256xf32>
    %489 = arith.mulf %488, %485 : vector<8x256xf32>
    %490 = arith.select %487, %485, %489 : vector<8x256xi1>, vector<8x256xf32>
    %c0_275 = arith.constant 0 : index
    %c0_276 = arith.constant 0 : index
    %c0_277 = arith.constant 0 : index
    %491 = vector.load %arg8[%c0_275, %c0_276, %c0_277] : memref<1x8x256xf32, #tpu.memory_space<vmem>>, vector<1x8x256xf32>
    %492 = vector.shape_cast %491 : vector<1x8x256xf32> to vector<8x256xf32>
    %493 = vector.shape_cast %490 : vector<8x256xf32> to vector<1x8x256xf32>
    tpu.vector_store %arg8[%c0_275, %c0_276, %c0_277], %493 {strides = array<i32>} : memref<1x8x256xf32, #tpu.memory_space<vmem>>, vector<1x8x256xf32>,
    return
  }
  func.func @transform_0(%arg0: i32) -> (i32, i32, i32) {
    %c0_i32 = arith.constant 0 : i32
    %c0_i32_0 = arith.constant 0 : i32
    %c0_i32_1 = arith.constant 0 : i32
    return %arg0, %c0_i32, %c0_i32_0 : i32, i32, i32
  }
  func.func @transform_1(%arg0: i32) -> (i32, i32, i32) {
    %c0_i32 = arith.constant 0 : i32
    %c0_i32_0 = arith.constant 0 : i32
    %c0_i32_1 = arith.constant 0 : i32
    return %arg0, %c0_i32, %c0_i32_0 : i32, i32, i32
  }
  func.func @transform_2(%arg0: i32) -> (i32, i32, i32) {
    %c0_i32 = arith.constant 0 : i32
    %c0_i32_0 = arith.constant 0 : i32
    %c0_i32_1 = arith.constant 0 : i32
    %c0_i32_2 = arith.constant 0 : i32
    return %c0_i32, %c0_i32_0, %c0_i32_1 : i32, i32, i32
  }
  func.func @transform_3(%arg0: i32) -> (i32, i32) {
    %c0_i32 = arith.constant 0 : i32
    %c0_i32_0 = arith.constant 0 : i32
    %c0_i32_1 = arith.constant 0 : i32
    return %c0_i32, %c0_i32_0 : i32, i32
  }
  func.func @transform_4(%arg0: i32) -> (i32, i32) {
    %c0_i32 = arith.constant 0 : i32
    %c0_i32_0 = arith.constant 0 : i32
    %c0_i32_1 = arith.constant 0 : i32
    return %c0_i32, %c0_i32_0 : i32, i32
  }
  func.func @transform_5(%arg0: i32) -> (i32, i32, i32) {
    %c0_i32 = arith.constant 0 : i32
    %c0_i32_0 = arith.constant 0 : i32
    %c0_i32_1 = arith.constant 0 : i32
    %c0_i32_2 = arith.constant 0 : i32
    return %c0_i32, %c0_i32_0, %c0_i32_1 : i32, i32, i32
  }
  func.func @transform_6(%arg0: i32) -> (i32, i32, i32) {
    %c0_i32 = arith.constant 0 : i32
    %c0_i32_0 = arith.constant 0 : i32
    %c0_i32_1 = arith.constant 0 : i32
    %c0_i32_2 = arith.constant 0 : i32
    return %c0_i32, %c0_i32_0, %c0_i32_1 : i32, i32, i32
  }
  func.func @transform_7(%arg0: i32) -> (i32, i32, i32) {
    %c0_i32 = arith.constant 0 : i32
    %c0_i32_0 = arith.constant 0 : i32
    %c0_i32_1 = arith.constant 0 : i32
    return %arg0, %c0_i32, %c0_i32_0 : i32, i32, i32
  }
}

</mosaic_0001>

<bundles_post_ra>
// kernel: midnet_forward.1
= control target key start
LH: loop header
LB: loop body
LE: loop exit
PB: predicated region body
PF: predicated region fallthrough
CT: control target
= control target key end

     0   :  { %s2551_s24 = smov 0   ;;  %s3388_s0 = inlined_call_operand.vmem [shape: bf16[2,8,256], index: 0, kind: input, shape index: {}]   ;;  %s3389_s1 = inlined_call_operand.vmem [shape: bf16[2,8,256], index: 1, kind: input, shape index: {}]   ;;  %s3390_s2 = inlined_call_operand.vmem [shape: f32[9,1,256], index: 2, kind: input, shape index: {}]   ;;  %s3391_s3 = inlined_call_operand.vmem [shape: bf16[72,8], index: 3, kind: input, shape index: {}]   ;;  %s3392_s4 = inlined_call_operand.vmem [shape: bf16[72,8], index: 4, kind: input, shape index: {}]   ;;  %s3393_s5 = inlined_call_operand.vmem [shape: bf16[6,72,8], index: 5, kind: input, shape index: {}]   ;;  %s3394_s6 = inlined_call_operand.vmem [shape: f32[7,8,1], index: 6, kind: input, shape index: {}]   ;;  %s3395_s7 = inlined_call_operand.vmem [shape: f32[2,8,256], index: 7, kind: output, shape index: {}]  }
   0x1 LB: > { %s2245_s25 = sadd.s32 4294967295, %s2500_s24   ;;  %p2249_p0 = scmp.ge.s32.totalorder %s2500_s24, 1  ;;  %s2500_s24 = sphi %s2551_s24, %s17_s24  }
   0x2   : > { %p247_p1 = scmp.lt.s32.totalorder %s2500_s24, 3 }
   0x4   : > { %p248_p2 = pnand %p2249_p0, %p247_p1 }
   0x5   : > { %p284_p3 = scmp.lt.s32.totalorder (!%p248_p2), %s2245_s25, 1  ;;  %v2502_v0 = vmov (!%p248_p2), 0   ;;  %vm355_vm0 = vcmask (!%p248_p2), 1043456   ;;  %v2452_v4 = vld [vmem:[%s3391_s3] sm:$0xff] (!%p248_p2)   ;;  %vm339_vm1 = vcmask (!%p248_p2), 64512   ;;  %v2453_v6 = vld [vmem:[%s3391_s3 + $0x8] sm:$0xff] (!%p248_p2)   ;;  %v447_v43 = vlaneseq (!%p248_p2) }
   0x6   : > { %251 = sbr.rel (%p248_p2) target bundleno = 2656 (0xa60), region = 48  ;;  %394 = vmatprep.mubr.bf16.mxu0 (!%p248_p2), %v2502_v0  ;;  %2448 = vset.pattern.permute.xlu0 (!%p248_p2), %v2502_v0  ;;  %v2454_v7 = vld [vmem:[%s3391_s3 + $0x10] sm:$0xff] (!%p248_p2)   ;;  %v2455_v8 = vld [vmem:[%s3391_s3 + $0x18] sm:$0xff] (!%p248_p2)   ;;  %v2456_v9 = vld [vmem:[%s3391_s3 + $0x20] ss:$0 sps:$4 sm:$0xff] (!%p248_p2)   ;;  %s2503_s20 = smov (!%p248_p2), 17  }
   0x7   : > { %751 = vmatprep.mubr.bf16.mxu1 (!%p248_p2), %v2502_v0  ;;  %2449 = vset.pattern.permute.xlu1 (!%p248_p2), %v2502_v0  ;;  %v2459_v17 = vld [vmem:[%s3392_s4] sm:$0xff] (!%p248_p2)   ;;  %s2504_s23 = smov (!%p248_p2), 16   ;;  %v2460_v22 = vld [vmem:[%s3392_s4 + $0x8] sm:$0xff] (!%p248_p2)   ;;  %v2461_v27 = vld [vmem:[%s3392_s4 + $0x10] sm:$0xff] (!%p248_p2)   ;;  %s2507_s9 = smov (!%p248_p2), 127   ;;  %v455_v46 = vshrl.u32 (!%p248_p2), %v447_v43, 7 }
   0x8   : > { %s2508_s10 = smov (!%p248_p2), 113   ;;  %v2462_v32 = vld [vmem:[%s3392_s4 + $0x18] sm:$0xff] (!%p248_p2)   ;;  %s2509_s13 = smov (!%p248_p2), 112   ;;  %v636_v34 = vld [vmem:[%s3394_s6] sm:$0xff] (!%p248_p2)  ;;  %v2300_v38 = vld [vmem:[%s3394_s6 + $0x8] sm:$0xff] (!%p248_p2)  ;;  %v2652_v48 = vand.u32 (!%p248_p2), 127, %v447_v43 }
   0x9   : > { %s2510_s16 = smov (!%p248_p2), 111   ;;  %v2463_v39 = vld [vmem:[%s3392_s4 + $0x20] ss:$0 sps:$4 sm:$0xff] (!%p248_p2)   ;;  %v2654_v50 = vsub.s32 (!%p248_p2), 0, %v455_v46  ;;  %v2656_v51 = vsub.s32 (!%p248_p2), 1, %v455_v46 }
   0xa   : > { %v452_v52 = vld [vmem:[%s3390_s2] sm:$0x3] (!%p248_p2)  ;;  %vm449_vm2 = vcmp.lt.s32.totalorder (!%p248_p2), %v2652_v48, 17  ;;  %v2269_v56 = vld [vmem:[%s3390_s2 + $0x2] sm:$0x3] (!%p248_p2)  ;;  %vm472_vm3 = vcmp.lt.s32.totalorder (!%p248_p2), %v2652_v48, 16 }
   0xb   : > { %v2663_v54 = vrot.slane (!%p248_p2), %v452_v52, %v2654_v50  ;;  %v2666_v55 = vrot.slane (!%p248_p2), %v452_v52, %v2656_v51  ;;  %v2677_v60 = vrot.slane (!%p248_p2), %v2269_v56, %v2654_v50  ;;  %v2270_v61 = vld [vmem:[%s3390_s2 + $0x4] sm:$0x3] (!%p248_p2)  ;;  %vm496_vm4 = vcmp.lt.s32.totalorder (!%p248_p2), %v2652_v48, 15 }
   0xc   : > { %vm520_vm5 = vcmp.lt.s32.totalorder (!%p248_p2), %v2652_v48, 1  ;;  %vm544_vm6 = vcmp.lt.s32.totalorder (!%p248_p2), %v2652_v48, 127  ;;  %vm568_vm7 = vcmp.lt.s32.totalorder (!%p248_p2), %v2652_v48, 113  ;;  %vm592_vm8 = vcmp.lt.s32.totalorder (!%p248_p2), %v2652_v48, 112 }
   0xd   : > { %s3397_s25 = smov (!%p284_p3, %s2245_s25), 1  ;;  %vm616_vm9 = vcmp.lt.s32.totalorder %v2652_v48, 111 }
   0xe   : > { %s2408_s26 = sshll.u32 %s3397_s25, 3 }
   0xf   : > { %s288_s29 = scalar_lea.vmem %s3388_s0, %s2408_s26  ;;  %s293_s19 = scalar_lea.vmem %s3389_s1, %s2408_s26 }
  0x10   : > { %v300_v1 = vld [vmem:[%s288_s29] sm:$0xff]  ;;  %s2505_s26 = smov 15   ;;  %s2506_s29 = smov 1  }
  0x11   : > { %v2262_v2 = vcombine.high %v300_v1, %v300_v1  ;;  %v2261_v3 = vcombine.low %v300_v1, %v300_v1  ;;  %v301_v10 = vld [vmem:[%s293_s19] sm:$0xff] }
  0x12   : > { %v2282_v11 = vcombine.high %v301_v10, %v301_v10  ;;  %v2281_v12 = vcombine.low %v301_v10, %v301_v10 }
  0x13   : > { %2263 = vmatprep.subr.msk.bf16.mxu0 %vm355_vm0, %v2262_v2  ;;  %v357_v5 = vsel %vm355_vm0, %v2261_v3, 0  ;;  %v2685_v2 = vrot.slane %v2269_v56, %v2656_v51 }
  0x14   : > { %363 = vmatpush1.bf16.msra.mxu0 %v357_v5  ;;  %2283 = vmatprep.subr.msk.bf16.mxu1 %vm355_vm0, %v2282_v11  ;;  %v714_v14 = vsel %vm355_vm0, %v2281_v12, 0 }
  0x15   : > { %720 = vmatpush1.bf16.msra.mxu1 %v714_v14 }
  0x17   : > { %2264 = vmatmul.mubr.msk.bf16.vlgmr.msra.gmra.mrb[0].mxu0 %vm339_vm1, %v2452_v4 }
  0x18   : > { %404 = vmatprep.mubr.bf16.mxu0 %v2502_v0  ;;  %2284 = vmatmul.mubr.msk.bf16.vlgmr.msra.gmra.mrb[0].mxu1 %vm339_vm1, %v2459_v17 }
  0x19   : > { %761 = vmatprep.mubr.bf16.mxu1 %v2502_v0 }
  0x1f   : > { %2265 = vmatmul.mubr.msk.bf16.gmra.mrb[4].mxu0 %vm339_vm1, %v2453_v6  ;;  %v2693_v6 = vrot.slane %v2270_v61, %v2654_v50 }
  0x20   : > { %414 = vmatprep.mubr.bf16.mxu0 %v2502_v0  ;;  %2285 = vmatmul.mubr.msk.bf16.gmra.mrb[4].mxu1 %vm339_vm1, %v2460_v22 }
  0x21   : > { %771 = vmatprep.mubr.bf16.mxu1 %v2502_v0 }
  0x27   : > { %2266 = vmatmul.mubr.msk.bf16.gmra.mrb[8].mxu0 %vm339_vm1, %v2454_v7  ;;  %v2696_v7 = vrot.slane %v2270_v61, %v2656_v51 }
  0x28   : > { %424 = vmatprep.mubr.bf16.mxu0 %v2502_v0  ;;  %2286 = vmatmul.mubr.msk.bf16.gmra.mrb[8].mxu1 %vm339_vm1, %v2461_v27 }
  0x29   : > { %781 = vmatprep.mubr.bf16.mxu1 %v2502_v0 }
  0x2f   : > { %2267 = vmatmul.mubr.msk.bf16.gmra.mrb[12].mxu0 %vm339_vm1, %v2455_v8  ;;  %v2271_v8 = vld [vmem:[%s3390_s2 + $0x6] sm:$0x3] }
  0x30   : > { %434 = vmatprep.mubr.bf16.mxu0 %v2502_v0  ;;  %2287 = vmatmul.mubr.msk.bf16.gmra.mrb[12].mxu1 %vm339_vm1, %v2462_v32 }
  0x31   : > { %791 = vmatprep.mubr.bf16.mxu1 %v2502_v0 }
  0x37   : > { %2268 = vmatmul.mubr.msk.bf16.gmra.mrb[16].mxu0 %vm339_vm1, %v2456_v9 }
  0x38   : > { %1108 = vmatprep.mubr.bf16.mxu0 %v2502_v0  ;;  %2288 = vmatmul.mubr.msk.bf16.gmra.mrb[16].mxu1 %vm339_vm1, %v2463_v39 }
  0x39   : > { %876 = vmatprep.mubr.bf16.mxu1 %v2502_v0 }
  0xea   : > { %v396_v13 = vpop.f32.mrb[0].mxu0 }
  0xeb   : > { %443 = vrot.lane.b32.xlu0 %v396_v13, %s2503_s20  ;;  %v398_v15 = vpop.f32.mrb[1].mxu0 }
  0xec   : > { %v400_v16 = vpop.f32.mrb[2].mxu0 }
  0xed   : > { %468 = vrot.lane.b32.xlu1 %v400_v16, %s2504_s23  ;;  %v402_v18 = vpop.f32.mrb[3].mxu0  ;;  %v2272_v16 = vld [vmem:[%s3390_s2 + $0xa] sm:$0x3] }
  0xef   : > { %445 = vrot.lane.b32.xlu0 %v398_v15, %s2503_s20 }
  0xf1   : > { %470 = vrot.lane.b32.xlu1 %v402_v18, %s2504_s23  ;;  %v2714_v18 = vrot.slane %v2271_v8, %v2654_v50 }
  0xf2   : > { %v406_v19 = vpop.f32.mrb[4].mxu0 }
  0xf3   : > { %492 = vrot.lane.b32.xlu0 %v406_v19, %s2505_s26  ;;  %v408_v20 = vpop.f32.mrb[5].mxu0  ;;  %v2717_v19 = vrot.slane %v2271_v8, %v2656_v51 }
  0xf4   : > { %v410_v21 = vpop.f32.mrb[6].mxu0 }
  0xf5   : > { %494 = vrot.lane.b32.xlu1 %v408_v20, %s2505_s26  ;;  %v412_v23 = vpop.f32.mrb[7].mxu0 }
  0xf7   : > { %516 = vrot.lane.b32.xlu0 %v410_v21, %s2506_s29 }
  0xf9   : > { %518 = vrot.lane.b32.xlu1 %v412_v23, %s2506_s29 }
  0xfa   : > { %v2619_v24 = vpop.f32.mrb[8].mxu0 }
  0xfb   : > { %v2621_v25 = vpop.f32.mrb[9].mxu0 }
  0xfc   : > { %v420_v26 = vpop.f32.mrb[10].mxu0 }
  0xfd   : > { %540 = vrot.lane.b32.xlu0 %v420_v26, %s2507_s9  ;;  %v422_v28 = vpop.f32.mrb[11].mxu0  ;;  %v2733_v26 = vrot.slane %v2272_v16, %v2656_v51 }
  0xfe   : > { %542 = vrot.lane.b32.xlu1 %v422_v28, %s2507_s9 }
 0x102   : > { %v426_v29 = vpop.f32.mrb[12].mxu0 }
 0x103   : > { %564 = vrot.lane.b32.xlu0 %v426_v29, %s2508_s10  ;;  %v428_v30 = vpop.f32.mrb[13].mxu0 }
 0x104   : > { %566 = vrot.lane.b32.xlu1 %v428_v30, %s2508_s10  ;;  %v430_v31 = vpop.f32.mrb[14].mxu0 }
 0x105   : > { %v432_v33 = vpop.f32.mrb[15].mxu0 }
 0x107   : > { %588 = vrot.lane.b32.xlu0 %v430_v31, %s2509_s13 }
 0x108   : > { %590 = vrot.lane.b32.xlu1 %v432_v33, %s2509_s13 }
 0x10a   : > { %v436_v35 = vpop.f32.mrb[16].mxu0 }
 0x10b   : > { %639 = vperm.xlu0 %2448, %v636_v34   ;;  %v438_v36 = vpop.f32.mrb[17].mxu0 }
 0x10c   : > { %612 = vrot.lane.b32.xlu1 %v436_v35, %s2510_s16  ;;  %v440_v37 = vpop.f32.mrb[18].mxu0  ;;  %v2274_v35 = vld [vmem:[%s3390_s2 + $0xe] sm:$0x3] }
 0x10d   : > { %v441_v40 = vpop.f32.mrb[19].mxu0  ;;  %v2762_v46 = vrot.slane %v2274_v35, %v2654_v50 }
 0x10f   : > { %1009 = vperm.xlu0 %2448, %v2300_v38  }
 0x110   : > { %614 = vrot.lane.b32.xlu1 %v438_v36, %s2510_s16 }
 0x15d   : > { %v444_v41 = vpop.permute.xlu0 %443 }
 0x15f   : > { %v469_v42 = vpop.permute.xlu1 %468 }
 0x161   : > { %v446_v44 = vpop.permute.xlu0 %445 }
 0x162   : > { %v450_v58 = vsel %vm449_vm2, %v444_v41, %v446_v44  ;;  %v451_v59 = vsel %vm449_vm2, %v446_v44, %v444_v41 }
 0x163   : > { %v471_v45 = vpop.permute.xlu1 %470  ;;  %v464_v63 = vmul.f32 %v2663_v54, %v451_v59  ;;  %v465_v1 = vmul.f32 %v2666_v55, %v450_v58 }
 0x164   : > { %v473_v4 = vsel %vm472_vm3, %v469_v42, %v471_v45  ;;  %v474_v5 = vsel %vm472_vm3, %v471_v45, %v469_v42  ;;  %v2275_v45 = vld [vmem:[%s3390_s2 + $0x10] sm:$0x3] }
 0x165   : > { %v493_v49 = vpop.permute.xlu0 %492  ;;  %v466_v12 = vadd.f32 %v464_v63, %v2619_v24  ;;  %v467_v13 = vadd.f32 %v465_v1, %v2621_v25  ;;  %v488_v14 = vmul.f32 %v2677_v60, %v474_v5  ;;  %v489_v15 = vmul.f32 %v2685_v2, %v473_v4  ;;  %v2273_v24 = vld [vmem:[%s3390_s2 + $0xc] sm:$0x3] }
 0x166   : > { %v2730_v25 = vrot.slane %v2272_v16, %v2654_v50  ;;  %v2743_v34 = vrot.slane %v2273_v24, %v2654_v50  ;;  %v2749_v38 = vrot.slane %v2273_v24, %v2656_v51  ;;  %v2775_v59 = vrot.slane %v2275_v45, %v2654_v50 }
 0x167   : > { %v495_v47 = vpop.permute.xlu1 %494  ;;  %v490_v28 = vadd.f32 %v488_v14, %v466_v12  ;;  %v491_v29 = vadd.f32 %v489_v15, %v467_v13  ;;  %v2778_v61 = vrot.slane %v2275_v45, %v2656_v51 }
 0x168   : > { %v497_v9 = vsel %vm496_vm4, %v493_v49, %v495_v47  ;;  %v498_v10 = vsel %vm496_vm4, %v495_v47, %v493_v49  ;;  %v2765_v47 = vrot.slane %v2274_v35, %v2656_v51 }
 0x169   : > { %v517_v57 = vpop.permute.xlu0 %516  ;;  %v512_v20 = vmul.f32 %v2693_v6, %v498_v10  ;;  %v513_v21 = vmul.f32 %v2696_v7, %v497_v9 }
 0x16b   : > { %v519_v53 = vpop.permute.xlu1 %518  ;;  %v514_v36 = vadd.f32 %v512_v20, %v490_v28  ;;  %v515_v37 = vadd.f32 %v513_v21, %v491_v29  ;;  %v2464_v29 = vld [vmem:[%s3393_s5] sm:$0xff]  }
 0x16c   : > { %v521_v22 = vsel %vm520_vm5, %v517_v57, %v519_v53  ;;  %v522_v23 = vsel %vm520_vm5, %v519_v53, %v517_v57 }
 0x16d   : > { %v536_v32 = vmul.f32 %v2714_v18, %v522_v23  ;;  %v537_v33 = vmul.f32 %v2717_v19, %v521_v22 }
 0x16f   : > { %v541_v3 = vpop.permute.xlu0 %540  ;;  %v538_v49 = vadd.f32 %v536_v32, %v514_v36  ;;  %v539_v52 = vadd.f32 %v537_v33, %v515_v37  ;;  %v2467_v32 = vld [vmem:[%s3393_s5 + $0x18] sm:$0xff]   ;;  %v2468_v33 = vld [vmem:[%s3393_s5 + $0x20] ss:$0 sps:$4 sm:$0xff]  }
 0x170   : > { %v543_v62 = vpop.permute.xlu1 %542 }
 0x171   : > { %v545_v30 = vsel %vm544_vm6, %v541_v3, %v543_v62  ;;  %v546_v31 = vsel %vm544_vm6, %v543_v62, %v541_v3 }
 0x172   : > { %v560_v40 = vmul.f32 %v2730_v25, %v545_v30  ;;  %v561_v41 = vmul.f32 %v2733_v26, %v546_v31  ;;  %v2465_v30 = vld [vmem:[%s3393_s5 + $0x8] sm:$0xff]   ;;  %v2466_v31 = vld [vmem:[%s3393_s5 + $0x10] sm:$0xff]  }
 0x174   : > { %v562_v62 = vadd.f32 %v560_v40, %v538_v49  ;;  %v563_v63 = vadd.f32 %v561_v41, %v539_v52 }
 0x175   : > { %v565_v17 = vpop.permute.xlu0 %564 }
 0x176   : > { %v567_v11 = vpop.permute.xlu1 %566 }
 0x177   : > { %v569_v42 = vsel %vm568_vm7, %v565_v17, %v567_v11  ;;  %v570_v43 = vsel %vm568_vm7, %v567_v11, %v565_v17 }
 0x178   : > { %v584_v57 = vmul.f32 %v2743_v34, %v569_v42  ;;  %v585_v58 = vmul.f32 %v2749_v38, %v570_v43 }
 0x179   : > { %v589_v39 = vpop.permute.xlu0 %588 }
 0x17a   : > { %v591_v27 = vpop.permute.xlu1 %590  ;;  %v586_v9 = vadd.f32 %v584_v57, %v562_v62  ;;  %v587_v10 = vadd.f32 %v585_v58, %v563_v63 }
 0x17b   : > { %v593_v53 = vsel %vm592_vm8, %v589_v39, %v591_v27  ;;  %v594_v56 = vsel %vm592_vm8, %v591_v27, %v589_v39 }
 0x17c   : > { %v608_v3 = vmul.f32 %v2762_v46, %v593_v53  ;;  %v609_v4 = vmul.f32 %v2765_v47, %v594_v56 }
 0x17e   : > { %v613_v44 = vpop.permute.xlu1 %612  ;;  %v610_v11 = vadd.f32 %v608_v3, %v586_v9  ;;  %v611_v12 = vadd.f32 %v609_v4, %v587_v10  ;;  %v2321_v4 = vld [vmem:[%s3394_s6 + $0x10] sm:$0xff] }
 0x182   : > { %v615_v1 = vpop.permute.xlu1 %614 }
 0x183   : > { %v617_v5 = vsel %vm616_vm9, %v613_v44, %v615_v1  ;;  %v618_v8 = vsel %vm616_vm9, %v615_v1, %v613_v44 }
 0x184   : > { %v632_v50 = vmul.f32 %v2775_v59, %v617_v5  ;;  %v633_v51 = vmul.f32 %v2778_v61, %v618_v8 }
 0x186   : > { %v634_v13 = vadd.f32 %v632_v50, %v610_v11  ;;  %v635_v14 = vadd.f32 %v633_v51, %v611_v12 }
 0x18a   : > { %v640_v15 = vpop.permute.xlu0 %639 }
 0x18b   : > { %v642_v16 = vadd.f32 %v640_v15, %v634_v13  ;;  %v643_v17 = vadd.f32 %v640_v15, %v635_v14 }
 0x18d   : > { %vm645_vm10 = vcmp.ge.f32.partialorder %v643_v17, 0.0  ;;  %v646_v20 = vmul.f32 0.01, %v642_v16  ;;  %v647_v21 = vmul.f32 0.01, %v643_v17  ;;  %vm644_vm11 = vcmp.ge.f32.partialorder %v642_v16, 0.0 }
 0x18e   : > { %v2834_v5 = vpop.permute.xlu0 %1009 }
 0x18f   : > { %v649_v22 = vsel %vm645_vm10, %v643_v17, %v647_v21  ;;  %v648_v23 = vsel %vm644_vm11, %v642_v16, %v646_v20 }
 0x190   : > { %v660_v24 = vpack.c.bf16 %v649_v22, %v649_v22  ;;  %v659_v27 = vpack.c.bf16 %v648_v23, %v648_v23 }
 0x192   : > { %2294 = vmatprep.subr.msk.bf16.mxu1 %vm355_vm0, %v660_v24  ;;  %v839_v28 = vsel %vm355_vm0, %v659_v27, 0 }
 0x193   : > { %845 = vmatpush1.bf16.msra.mxu1 %v839_v28 }
 0x196   : > { %2295 = vmatmul.mubr.msk.bf16.vlgmr.msra.gmra.mrb[0].mxu1 %vm339_vm1, %v2464_v29 }
 0x197   : > { %886 = vmatprep.mubr.bf16.mxu1 %v2502_v0 }
 0x19e   : > { %2296 = vmatmul.mubr.msk.bf16.gmra.mrb[4].mxu1 %vm339_vm1, %v2465_v30 }
 0x19f   : > { %896 = vmatprep.mubr.bf16.mxu1 %v2502_v0 }
 0x1a6   : > { %2297 = vmatmul.mubr.msk.bf16.gmra.mrb[8].mxu1 %vm339_vm1, %v2466_v31 }
 0x1a7   : > { %906 = vmatprep.mubr.bf16.mxu1 %v2502_v0 }
 0x1ae   : > { %2298 = vmatmul.mubr.msk.bf16.gmra.mrb[12].mxu1 %vm339_vm1, %v2467_v32 }
 0x1af   : > { %916 = vmatprep.mubr.bf16.mxu1 %v2502_v0 }
 0x1b6   : > { %2299 = vmatmul.mubr.msk.bf16.gmra.mrb[16].mxu1 %vm339_vm1, %v2468_v33 }
 0x1b7   : > { %1572 = vmatprep.mubr.bf16.mxu1 %v2502_v0 }
 0x269   : > { %v878_v35 = vpop.f32.mrb[0].mxu1 }
 0x26a   : > { %925 = vrot.lane.b32.xlu0 %v878_v35, %s2503_s20  ;;  %v880_v36 = vpop.f32.mrb[1].mxu1 }
 0x26b   : > { %927 = vrot.lane.b32.xlu1 %v880_v36, %s2503_s20  ;;  %v882_v37 = vpop.f32.mrb[2].mxu1 }
 0x26c   : > { %v884_v39 = vpop.f32.mrb[3].mxu1 }
 0x26e   : > { %935 = vrot.lane.b32.xlu0 %v882_v37, %s2504_s23 }
 0x26f   : > { %937 = vrot.lane.b32.xlu1 %v884_v39, %s2504_s23 }
 0x271   : > { %v888_v40 = vpop.f32.mrb[4].mxu1 }
 0x272   : > { %945 = vrot.lane.b32.xlu0 %v888_v40, %s2505_s26  ;;  %v890_v41 = vpop.f32.mrb[5].mxu1 }
 0x273   : > { %947 = vrot.lane.b32.xlu1 %v890_v41, %s2505_s26  ;;  %v892_v42 = vpop.f32.mrb[6].mxu1 }
 0x274   : > { %v894_v43 = vpop.f32.mrb[7].mxu1 }
 0x276   : > { %955 = vrot.lane.b32.xlu0 %v892_v42, %s2506_s29 }
 0x277   : > { %957 = vrot.lane.b32.xlu1 %v894_v43, %s2506_s29 }
 0x279   : > { %v898_v44 = vpop.f32.mrb[8].mxu1 }
 0x27a   : > { %v900_v45 = vpop.f32.mrb[9].mxu1 }
 0x27b   : > { %v902_v49 = vpop.f32.mrb[10].mxu1 }
 0x27c   : > { %965 = vrot.lane.b32.xlu0 %v902_v49, %s2507_s9  ;;  %v904_v52 = vpop.f32.mrb[11].mxu1 }
 0x27d   : > { %967 = vrot.lane.b32.xlu1 %v904_v52, %s2507_s9 }
 0x281   : > { %v908_v53 = vpop.f32.mrb[12].mxu1 }
 0x282   : > { %975 = vrot.lane.b32.xlu0 %v908_v53, %s2508_s10  ;;  %v910_v56 = vpop.f32.mrb[13].mxu1 }
 0x283   : > { %977 = vrot.lane.b32.xlu1 %v910_v56, %s2508_s10  ;;  %v912_v57 = vpop.f32.mrb[14].mxu1 }
 0x284   : > { %v914_v58 = vpop.f32.mrb[15].mxu1 }
 0x286   : > { %985 = vrot.lane.b32.xlu0 %v912_v57, %s2509_s13 }
 0x287   : > { %987 = vrot.lane.b32.xlu1 %v914_v58, %s2509_s13 }
 0x289   : > { %v918_v62 = vpop.f32.mrb[16].mxu1 }
 0x28a   : > { %v920_v63 = vpop.f32.mrb[17].mxu1 }
 0x28b   : > { %995 = vrot.lane.b32.xlu1 %v918_v62, %s2510_s16  ;;  %997 = vrot.lane.b32.xlu0 %v920_v63, %s2510_s16  ;;  %v922_v1 = vpop.f32.mrb[18].mxu1 }
 0x28c   : > { %v923_v3 = vpop.f32.mrb[19].mxu1 }
 0x28f   : > { %1241 = vperm.xlu1 %2449, %v2321_v4  }
 0x2dc   : > { %v926_v8 = vpop.permute.xlu0 %925 }
 0x2dd   : > { %v928_v9 = vpop.permute.xlu1 %927 }
 0x2de   : > { %v929_v12 = vsel %vm449_vm2, %v926_v8, %v928_v9  ;;  %v930_v13 = vsel %vm449_vm2, %v928_v9, %v926_v8 }
 0x2df   : > { %v931_v20 = vmul.f32 %v930_v13, %v2663_v54  ;;  %v932_v21 = vmul.f32 %v929_v12, %v2666_v55 }
 0x2e0   : > { %v936_v10 = vpop.permute.xlu0 %935 }
 0x2e1   : > { %v938_v50 = vpop.permute.xlu1 %937  ;;  %v933_v32 = vadd.f32 %v931_v20, %v898_v44  ;;  %v934_v33 = vadd.f32 %v932_v21, %v900_v45 }
 0x2e2   : > { %v939_v16 = vsel %vm472_vm3, %v936_v10, %v938_v50  ;;  %v940_v17 = vsel %vm472_vm3, %v938_v50, %v936_v10 }
 0x2e3   : > { %v941_v27 = vmul.f32 %v940_v17, %v2677_v60  ;;  %v942_v28 = vmul.f32 %v939_v16, %v2685_v2 }
 0x2e4   : > { %v946_v51 = vpop.permute.xlu0 %945 }
 0x2e5   : > { %v948_v11 = vpop.permute.xlu1 %947  ;;  %v943_v41 = vadd.f32 %v941_v27, %v933_v32  ;;  %v944_v42 = vadd.f32 %v942_v28, %v934_v33 }
 0x2e6   : > { %v949_v22 = vsel %vm496_vm4, %v946_v51, %v948_v11  ;;  %v950_v23 = vsel %vm496_vm4, %v948_v11, %v946_v51 }
 0x2e7   : > { %v951_v35 = vmul.f32 %v950_v23, %v2693_v6  ;;  %v952_v36 = vmul.f32 %v949_v22, %v2696_v7 }
 0x2e8   : > { %v956_v14 = vpop.permute.xlu0 %955 }
 0x2e9   : > { %v958_v15 = vpop.permute.xlu1 %957  ;;  %v953_v53 = vadd.f32 %v951_v35, %v943_v41  ;;  %v954_v56 = vadd.f32 %v952_v36, %v944_v42  ;;  %v2471_v41 = vld [vmem:[%s3393_s5 + $0x34] sm:$0xff]   ;;  %v2472_v42 = vld [vmem:[%s3393_s5 + $0x3c] sm:$0xff]  }
 0x2ea   : > { %v959_v30 = vsel %vm520_vm5, %v956_v14, %v958_v15  ;;  %v960_v31 = vsel %vm520_vm5, %v958_v15, %v956_v14 }
 0x2eb   : > { %v961_v43 = vmul.f32 %v960_v31, %v2714_v18  ;;  %v962_v49 = vmul.f32 %v959_v30, %v2717_v19 }
 0x2ed   : > { %v963_v63 = vadd.f32 %v961_v43, %v953_v53  ;;  %v964_v1 = vadd.f32 %v962_v49, %v954_v56  ;;  %v2473_v43 = vld [vmem:[%s3393_s5 + $0x44] ss:$0 sps:$4 sm:$0xff]  }
 0x2ee   : > { %v966_v24 = vpop.permute.xlu0 %965 }
 0x2ef   : > { %v968_v29 = vpop.permute.xlu1 %967 }
 0x2f0   : > { %v969_v37 = vsel %vm544_vm6, %v966_v24, %v968_v29  ;;  %v970_v39 = vsel %vm544_vm6, %v968_v29, %v966_v24 }
 0x2f1   : > { %v971_v57 = vmul.f32 %v969_v37, %v2730_v25  ;;  %v972_v58 = vmul.f32 %v970_v39, %v2733_v26 }
 0x2f3   : > { %v973_v50 = vadd.f32 %v971_v57, %v963_v63  ;;  %v974_v51 = vadd.f32 %v972_v58, %v964_v1 }
 0x2f4   : > { %v976_v40 = vpop.permute.xlu0 %975 }
 0x2f5   : > { %v978_v52 = vpop.permute.xlu1 %977 }
 0x2f6   : > { %v979_v44 = vsel %vm568_vm7, %v976_v40, %v978_v52  ;;  %v980_v45 = vsel %vm568_vm7, %v978_v52, %v976_v40  ;;  %v2470_v40 = vld [vmem:[%s3393_s5 + $0x2c] sm:$0xff]  }
 0x2f7   : > { %v981_v3 = vmul.f32 %v979_v44, %v2743_v34  ;;  %v982_v4 = vmul.f32 %v980_v45, %v2749_v38 }
 0x2f8   : > { %v986_v62 = vpop.permute.xlu0 %985 }
 0x2f9   : > { %v988_v8 = vpop.permute.xlu1 %987  ;;  %v983_v13 = vadd.f32 %v981_v3, %v973_v50  ;;  %v984_v14 = vadd.f32 %v982_v4, %v974_v51 }
 0x2fa   : > { %v989_v9 = vsel %vm592_vm8, %v986_v62, %v988_v8  ;;  %v990_v10 = vsel %vm592_vm8, %v988_v8, %v986_v62 }
 0x2fb   : > { %v991_v11 = vmul.f32 %v989_v9, %v2762_v46  ;;  %v992_v12 = vmul.f32 %v990_v10, %v2765_v47 }
 0x2fd   : > { %v996_v15 = vpop.permute.xlu1 %995  ;;  %v998_v16 = vpop.permute.xlu0 %997  ;;  %v993_v21 = vadd.f32 %v991_v11, %v983_v13  ;;  %v994_v22 = vadd.f32 %v992_v12, %v984_v14  ;;  %v2342_v13 = vld [vmem:[%s3394_s6 + $0x18] sm:$0xff] }
 0x2fe   : > { %v999_v17 = vsel %vm616_vm9, %v996_v15, %v998_v16  ;;  %v1000_v20 = vsel %vm616_vm9, %v998_v16, %v996_v15 }
 0x2ff   : > { %v1001_v23 = vmul.f32 %v999_v17, %v2775_v59  ;;  %v1002_v24 = vmul.f32 %v1000_v20, %v2778_v61 }
 0x301   : > { %v1003_v27 = vadd.f32 %v1001_v23, %v993_v21  ;;  %v1004_v28 = vadd.f32 %v1002_v24, %v994_v22 }
 0x303   : > { %v1012_v29 = vadd.f32 %v2834_v5, %v1003_v27  ;;  %v1013_v30 = vadd.f32 %v2834_v5, %v1004_v28  ;;  %v2469_v5 = vld [vmem:[%s3393_s5 + $0x24] sm:$0xff]  }
 0x305   : > { %v1017_v31 = vmul.f32 0.01, %v1013_v30  ;;  %vm1015_vm12 = vcmp.ge.f32.partialorder %v1013_v30, 0.0  ;;  %vm1014_vm13 = vcmp.ge.f32.partialorder %v1012_v29, 0.0  ;;  %v1016_v32 = vmul.f32 0.01, %v1012_v29 }
 0x307   : > { %v2886_v33 = vsel %vm1015_vm12, %v1013_v30, %v1017_v31  ;;  %v2888_v35 = vsel %vm1014_vm13, %v1012_v29, %v1016_v32 }
 0x308   : > { %v1021_v36 = vpack.c.bf16 %v2886_v33, %v2886_v33  ;;  %v1020_v37 = vpack.c.bf16 %v2888_v35, %v2888_v35 }
 0x30a   : > { %2315 = vmatprep.subr.msk.bf16.mxu0 %vm355_vm0, %v1021_v36  ;;  %v1071_v39 = vsel %vm355_vm0, %v1020_v37, 0 }
 0x30b   : > { %1077 = vmatpush1.bf16.msra.mxu0 %v1071_v39 }
 0x30e   : > { %2316 = vmatmul.mubr.msk.bf16.vlgmr.msra.gmra.mrb[20].mxu0 %vm339_vm1, %v2469_v5  ;;  %v2940_v14 = vpop.permute.xlu1 %1241 }
 0x30f   : > { %1118 = vmatprep.mubr.bf16.mxu0 %v2502_v0 }
 0x316   : > { %2317 = vmatmul.mubr.msk.bf16.gmra.mrb[24].mxu0 %vm339_vm1, %v2470_v40 }
 0x317   : > { %1128 = vmatprep.mubr.bf16.mxu0 %v2502_v0 }
 0x31e   : > { %2318 = vmatmul.mubr.msk.bf16.gmra.mrb[28].mxu0 %vm339_vm1, %v2471_v41 }
 0x31f   : > { %1138 = vmatprep.mubr.bf16.mxu0 %v2502_v0 }
 0x326   : > { %2319 = vmatmul.mubr.msk.bf16.gmra.mrb[32].mxu0 %vm339_vm1, %v2472_v42 }
 0x327   : > { %1148 = vmatprep.mubr.bf16.mxu0 %v2502_v0 }
 0x32e   : > { %2320 = vmatmul.mubr.msk.bf16.gmra.mrb[36].mxu0 %vm339_vm1, %v2473_v43 }
 0x32f   : > { %1340 = vmatprep.mubr.bf16.mxu0 %v2502_v0 }
 0x3e1   : > { %v1110_v49 = vpop.f32.mrb[20].mxu0 }
 0x3e2   : > { %1157 = vrot.lane.b32.xlu1 %v1110_v49, %s2503_s20  ;;  %v1112_v52 = vpop.f32.mrb[21].mxu0 }
 0x3e3   : > { %1159 = vrot.lane.b32.xlu0 %v1112_v52, %s2503_s20  ;;  %v1114_v44 = vpop.f32.mrb[22].mxu0 }
 0x3e4   : > { %v1116_v45 = vpop.f32.mrb[23].mxu0 }
 0x3e6   : > { %1167 = vrot.lane.b32.xlu1 %v1114_v44, %s2504_s23 }
 0x3e7   : > { %1169 = vrot.lane.b32.xlu0 %v1116_v45, %s2504_s23 }
 0x3e9   : > { %v1120_v53 = vpop.f32.mrb[24].mxu0 }
 0x3ea   : > { %1177 = vrot.lane.b32.xlu1 %v1120_v53, %s2505_s26  ;;  %v1122_v56 = vpop.f32.mrb[25].mxu0 }
 0x3eb   : > { %1179 = vrot.lane.b32.xlu0 %v1122_v56, %s2505_s26  ;;  %v1124_v57 = vpop.f32.mrb[26].mxu0 }
 0x3ec   : > { %v1126_v58 = vpop.f32.mrb[27].mxu0 }
 0x3ee   : > { %1187 = vrot.lane.b32.xlu1 %v1124_v57, %s2506_s29 }
 0x3ef   : > { %1189 = vrot.lane.b32.xlu0 %v1126_v58, %s2506_s29 }
 0x3f1   : > { %v1130_v62 = vpop.f32.mrb[28].mxu0 }
 0x3f2   : > { %v1132_v63 = vpop.f32.mrb[29].mxu0 }
 0x3f3   : > { %v1134_v1 = vpop.f32.mrb[30].mxu0 }
 0x3f4   : > { %1197 = vrot.lane.b32.xlu1 %v1134_v1, %s2507_s9  ;;  %v1136_v3 = vpop.f32.mrb[31].mxu0 }
 0x3f5   : > { %1199 = vrot.lane.b32.xlu0 %v1136_v3, %s2507_s9 }
 0x3f9   : > { %v1140_v4 = vpop.f32.mrb[32].mxu0 }
 0x3fa   : > { %1207 = vrot.lane.b32.xlu1 %v1140_v4, %s2508_s10  ;;  %v1142_v8 = vpop.f32.mrb[33].mxu0 }
 0x3fb   : > { %1209 = vrot.lane.b32.xlu0 %v1142_v8, %s2508_s10  ;;  %v1144_v9 = vpop.f32.mrb[34].mxu0 }
 0x3fc   : > { %v1146_v10 = vpop.f32.mrb[35].mxu0 }
 0x3fe   : > { %1217 = vrot.lane.b32.xlu1 %v1144_v9, %s2509_s13 }
 0x3ff   : > { %1219 = vrot.lane.b32.xlu0 %v1146_v10, %s2509_s13 }
 0x401   : > { %v1150_v50 = vpop.f32.mrb[36].mxu0 }
 0x402   : > { %v1152_v51 = vpop.f32.mrb[37].mxu0 }
 0x403   : > { %1227 = vrot.lane.b32.xlu0 %v1150_v50, %s2510_s16  ;;  %1229 = vrot.lane.b32.xlu1 %v1152_v51, %s2510_s16  ;;  %v1154_v11 = vpop.f32.mrb[38].mxu0 }
 0x404   : > { %v1155_v12 = vpop.f32.mrb[39].mxu0 }
 0x407   : > { %1473 = vperm.xlu0 %2448, %v2342_v13  }
 0x454   : > { %v1158_v15 = vpop.permute.xlu1 %1157 }
 0x455   : > { %v1160_v16 = vpop.permute.xlu0 %1159 }
 0x456   : > { %v1161_v23 = vsel %vm449_vm2, %v1158_v15, %v1160_v16  ;;  %v1162_v24 = vsel %vm449_vm2, %v1160_v16, %v1158_v15 }
 0x457   : > { %v1163_v31 = vmul.f32 %v1162_v24, %v2663_v54  ;;  %v1164_v32 = vmul.f32 %v1161_v23, %v2666_v55 }
 0x458   : > { %v1168_v17 = vpop.permute.xlu1 %1167 }
 0x459   : > { %v1170_v20 = vpop.permute.xlu0 %1169  ;;  %v1165_v49 = vadd.f32 %v1163_v31, %v1130_v62  ;;  %v1166_v52 = vadd.f32 %v1164_v32, %v1132_v63 }
 0x45a   : > { %v1171_v29 = vsel %vm472_vm3, %v1168_v17, %v1170_v20  ;;  %v1172_v30 = vsel %vm472_vm3, %v1170_v20, %v1168_v17 }
 0x45b   : > { %v1173_v5 = vmul.f32 %v1172_v30, %v2677_v60  ;;  %v1174_v40 = vmul.f32 %v1171_v29, %v2685_v2 }
 0x45c   : > { %v1178_v21 = vpop.permute.xlu1 %1177 }
 0x45d   : > { %v1180_v22 = vpop.permute.xlu0 %1179  ;;  %v1175_v58 = vadd.f32 %v1173_v5, %v1165_v49  ;;  %v1176_v1 = vadd.f32 %v1174_v40, %v1166_v52 }
 0x45e   : > { %v1181_v36 = vsel %vm496_vm4, %v1178_v21, %v1180_v22  ;;  %v1182_v37 = vsel %vm496_vm4, %v1180_v22, %v1178_v21 }
 0x45f   : > { %v1183_v44 = vmul.f32 %v1182_v37, %v2693_v6  ;;  %v1184_v45 = vmul.f32 %v1181_v36, %v2696_v7 }
 0x460   : > { %v1188_v27 = vpop.permute.xlu1 %1187 }
 0x461   : > { %v1190_v28 = vpop.permute.xlu0 %1189  ;;  %v1185_v9 = vadd.f32 %v1183_v44, %v1175_v58  ;;  %v1186_v10 = vadd.f32 %v1184_v45, %v1176_v1  ;;  %v2474_v1 = vld [vmem:[%s3393_s5 + $0x48] sm:$0xff]  }
 0x462   : > { %v1191_v42 = vsel %vm520_vm5, %v1188_v27, %v1190_v28  ;;  %v1192_v43 = vsel %vm520_vm5, %v1190_v28, %v1188_v27 }
 0x463   : > { %v1193_v3 = vmul.f32 %v1192_v43, %v2714_v18  ;;  %v1194_v4 = vmul.f32 %v1191_v42, %v2717_v19 }
 0x465   : > { %v1195_v12 = vadd.f32 %v1193_v3, %v1185_v9  ;;  %v1196_v13 = vadd.f32 %v1194_v4, %v1186_v10  ;;  %v2476_v3 = vld [vmem:[%s3393_s5 + $0x58] sm:$0xff]   ;;  %v2477_v4 = vld [vmem:[%s3393_s5 + $0x60] sm:$0xff]  }
 0x466   : > { %v1198_v39 = vpop.permute.xlu1 %1197 }
 0x467   : > { %v1200_v41 = vpop.permute.xlu0 %1199 }
 0x468   : > { %v1201_v53 = vsel %vm544_vm6, %v1198_v39, %v1200_v41  ;;  %v1202_v56 = vsel %vm544_vm6, %v1200_v41, %v1198_v39 }
 0x469   : > { %v1203_v50 = vmul.f32 %v1201_v53, %v2730_v25  ;;  %v1204_v51 = vmul.f32 %v1202_v56, %v2733_v26 }
 0x46b   : > { %v1205_v22 = vadd.f32 %v1203_v50, %v1195_v12  ;;  %v1206_v23 = vadd.f32 %v1204_v51, %v1196_v13 }
 0x46c   : > { %v1208_v57 = vpop.permute.xlu1 %1207 }
 0x46d   : > { %v1210_v8 = vpop.permute.xlu0 %1209 }
 0x46e   : > { %v1211_v62 = vsel %vm568_vm7, %v1208_v57, %v1210_v8  ;;  %v1212_v63 = vsel %vm568_vm7, %v1210_v8, %v1208_v57  ;;  %v2478_v8 = vld [vmem:[%s3393_s5 + $0x68] ss:$0 sps:$4 sm:$0xff]  }
 0x46f   : > { %v1213_v15 = vmul.f32 %v1211_v62, %v2743_v34  ;;  %v1214_v16 = vmul.f32 %v1212_v63, %v2749_v38 }
 0x470   : > { %v1218_v11 = vpop.permute.xlu1 %1217 }
 0x471   : > { %v1220_v17 = vpop.permute.xlu0 %1219  ;;  %v1215_v28 = vadd.f32 %v1213_v15, %v1205_v22  ;;  %v1216_v29 = vadd.f32 %v1214_v16, %v1206_v23 }
 0x472   : > { %v1221_v20 = vsel %vm592_vm8, %v1218_v11, %v1220_v17  ;;  %v1222_v21 = vsel %vm592_vm8, %v1220_v17, %v1218_v11 }
 0x473   : > { %v1223_v24 = vmul.f32 %v1221_v20, %v2762_v46  ;;  %v1224_v27 = vmul.f32 %v1222_v21, %v2765_v47 }
 0x475   : > { %v1228_v30 = vpop.permute.xlu0 %1227  ;;  %v1230_v31 = vpop.permute.xlu1 %1229  ;;  %v1225_v37 = vadd.f32 %v1223_v24, %v1215_v28  ;;  %v1226_v39 = vadd.f32 %v1224_v27, %v1216_v29 }
 0x476   : > { %v1231_v32 = vsel %vm616_vm9, %v1228_v30, %v1230_v31  ;;  %v1232_v36 = vsel %vm616_vm9, %v1230_v31, %v1228_v30  ;;  %v2363_v30 = vld [vmem:[%s3394_s6 + $0x20] sm:$0xff] }
 0x477   : > { %v1233_v5 = vmul.f32 %v1231_v32, %v2775_v59  ;;  %v1234_v40 = vmul.f32 %v1232_v36, %v2778_v61 }
 0x479   : > { %v1235_v41 = vadd.f32 %v1233_v5, %v1225_v37  ;;  %v1236_v42 = vadd.f32 %v1234_v40, %v1226_v39 }
 0x47b   : > { %v1244_v43 = vadd.f32 %v2940_v14, %v1235_v41  ;;  %v1245_v49 = vadd.f32 %v2940_v14, %v1236_v42  ;;  %v2475_v14 = vld [vmem:[%s3393_s5 + $0x50] sm:$0xff]  }
 0x47d   : > { %v1249_v52 = vmul.f32 0.01, %v1245_v49  ;;  %vm1247_vm14 = vcmp.ge.f32.partialorder %v1245_v49, 0.0  ;;  %vm1246_vm15 = vcmp.ge.f32.partialorder %v1244_v43, 0.0  ;;  %v1248_v44 = vmul.f32 0.01, %v1244_v43 }
 0x47f   : > { %v1251_v45 = vsel %vm1247_vm14, %v1245_v49, %v1249_v52  ;;  %v1250_v53 = vsel %vm1246_vm15, %v1244_v43, %v1248_v44 }
 0x480   : > { %v1253_v56 = vpack.c.bf16 %v1251_v45, %v1251_v45  ;;  %v1252_v57 = vpack.c.bf16 %v1250_v53, %v1250_v53 }
 0x482   : > { %2336 = vmatprep.subr.msk.bf16.mxu0 %vm355_vm0, %v1253_v56  ;;  %v1303_v58 = vsel %vm355_vm0, %v1252_v57, 0 }
 0x483   : > { %1309 = vmatpush1.bf16.msra.mxu0 %v1303_v58 }
 0x486   : > { %2337 = vmatmul.mubr.msk.bf16.vlgmr.msra.gmra.mrb[40].mxu0 %vm339_vm1, %v2474_v1  ;;  %v3038_v31 = vpop.permute.xlu0 %1473 }
 0x487   : > { %1350 = vmatprep.mubr.bf16.mxu0 %v2502_v0 }
 0x48e   : > { %2338 = vmatmul.mubr.msk.bf16.gmra.mrb[44].mxu0 %vm339_vm1, %v2475_v14 }
 0x48f   : > { %1360 = vmatprep.mubr.bf16.mxu0 %v2502_v0 }
 0x496   : > { %2339 = vmatmul.mubr.msk.bf16.gmra.mrb[48].mxu0 %vm339_vm1, %v2476_v3 }
 0x497   : > { %1370 = vmatprep.mubr.bf16.mxu0 %v2502_v0 }
 0x49e   : > { %2340 = vmatmul.mubr.msk.bf16.gmra.mrb[52].mxu0 %vm339_vm1, %v2477_v4 }
 0x49f   : > { %1380 = vmatprep.mubr.bf16.mxu0 %v2502_v0 }
 0x4a6   : > { %2341 = vmatmul.mubr.msk.bf16.gmra.mrb[56].mxu0 %vm339_vm1, %v2478_v8 }
 0x4a7   : > { %1804 = vmatprep.mubr.bf16.mxu0 %v2502_v0 }
 0x559   : > { %v1342_v62 = vpop.f32.mrb[40].mxu0 }
 0x55a   : > { %1389 = vrot.lane.b32.xlu0 %v1342_v62, %s2503_s20  ;;  %v1344_v63 = vpop.f32.mrb[41].mxu0 }
 0x55b   : > { %1391 = vrot.lane.b32.xlu1 %v1344_v63, %s2503_s20  ;;  %v1346_v9 = vpop.f32.mrb[42].mxu0 }
 0x55c   : > { %v1348_v10 = vpop.f32.mrb[43].mxu0 }
 0x55e   : > { %1399 = vrot.lane.b32.xlu0 %v1346_v9, %s2504_s23 }
 0x55f   : > { %1401 = vrot.lane.b32.xlu1 %v1348_v10, %s2504_s23 }
 0x561   : > { %v1352_v50 = vpop.f32.mrb[44].mxu0 }
 0x562   : > { %1409 = vrot.lane.b32.xlu0 %v1352_v50, %s2505_s26  ;;  %v1354_v51 = vpop.f32.mrb[45].mxu0 }
 0x563   : > { %1411 = vrot.lane.b32.xlu1 %v1354_v51, %s2505_s26  ;;  %v1356_v11 = vpop.f32.mrb[46].mxu0 }
 0x564   : > { %v1358_v12 = vpop.f32.mrb[47].mxu0 }
 0x566   : > { %1419 = vrot.lane.b32.xlu0 %v1356_v11, %s2506_s29 }
 0x567   : > { %1421 = vrot.lane.b32.xlu1 %v1358_v12, %s2506_s29 }
 0x569   : > { %v1362_v13 = vpop.f32.mrb[48].mxu0 }
 0x56a   : > { %v1364_v15 = vpop.f32.mrb[49].mxu0 }
 0x56b   : > { %v1366_v16 = vpop.f32.mrb[50].mxu0 }
 0x56c   : > { %1429 = vrot.lane.b32.xlu0 %v1366_v16, %s2507_s9  ;;  %v1368_v17 = vpop.f32.mrb[51].mxu0 }
 0x56d   : > { %1431 = vrot.lane.b32.xlu1 %v1368_v17, %s2507_s9 }
 0x571   : > { %v1372_v20 = vpop.f32.mrb[52].mxu0 }
 0x572   : > { %1439 = vrot.lane.b32.xlu0 %v1372_v20, %s2508_s10  ;;  %v1374_v21 = vpop.f32.mrb[53].mxu0 }
 0x573   : > { %1441 = vrot.lane.b32.xlu1 %v1374_v21, %s2508_s10  ;;  %v1376_v22 = vpop.f32.mrb[54].mxu0 }
 0x574   : > { %v1378_v23 = vpop.f32.mrb[55].mxu0 }
 0x576   : > { %1449 = vrot.lane.b32.xlu0 %v1376_v22, %s2509_s13 }
 0x577   : > { %1451 = vrot.lane.b32.xlu1 %v1378_v23, %s2509_s13 }
 0x579   : > { %v1382_v24 = vpop.f32.mrb[56].mxu0 }
 0x57a   : > { %v1384_v27 = vpop.f32.mrb[57].mxu0 }
 0x57b   : > { %1459 = vrot.lane.b32.xlu1 %v1382_v24, %s2510_s16  ;;  %1461 = vrot.lane.b32.xlu0 %v1384_v27, %s2510_s16  ;;  %v1386_v28 = vpop.f32.mrb[58].mxu0 }
 0x57c   : > { %v1387_v29 = vpop.f32.mrb[59].mxu0 }
 0x57f   : > { %1705 = vperm.xlu1 %2449, %v2363_v30  }
 0x5cc   : > { %v1390_v32 = vpop.permute.xlu0 %1389 }
 0x5cd   : > { %v1392_v36 = vpop.permute.xlu1 %1391 }
 0x5ce   : > { %v1393_v41 = vsel %vm449_vm2, %v1390_v32, %v1392_v36  ;;  %v1394_v42 = vsel %vm449_vm2, %v1392_v36, %v1390_v32 }
 0x5cf   : > { %v1395_v45 = vmul.f32 %v1394_v42, %v2663_v54  ;;  %v1396_v53 = vmul.f32 %v1393_v41, %v2666_v55 }
 0x5d0   : > { %v1400_v37 = vpop.permute.xlu0 %1399 }
 0x5d1   : > { %v1402_v39 = vpop.permute.xlu1 %1401  ;;  %v1397_v62 = vadd.f32 %v1395_v45, %v1362_v13  ;;  %v1398_v63 = vadd.f32 %v1396_v53, %v1364_v15 }
 0x5d2   : > { %v1403_v52 = vsel %vm472_vm3, %v1400_v37, %v1402_v39  ;;  %v1404_v44 = vsel %vm472_vm3, %v1402_v39, %v1400_v37 }
 0x5d3   : > { %v1405_v1 = vmul.f32 %v1404_v44, %v2677_v60  ;;  %v1406_v14 = vmul.f32 %v1403_v52, %v2685_v2 }
 0x5d4   : > { %v1410_v5 = vpop.permute.xlu0 %1409 }
 0x5d5   : > { %v1412_v40 = vpop.permute.xlu1 %1411  ;;  %v1407_v12 = vadd.f32 %v1405_v1, %v1397_v62  ;;  %v1408_v16 = vadd.f32 %v1406_v14, %v1398_v63 }
 0x5d6   : > { %v1413_v56 = vsel %vm496_vm4, %v1410_v5, %v1412_v40  ;;  %v1414_v57 = vsel %vm496_vm4, %v1412_v40, %v1410_v5 }
 0x5d7   : > { %v1415_v9 = vmul.f32 %v1414_v57, %v2693_v6  ;;  %v1416_v10 = vmul.f32 %v1413_v56, %v2696_v7 }
 0x5d8   : > { %v1420_v43 = vpop.permute.xlu0 %1419 }
 0x5d9   : > { %v1422_v49 = vpop.permute.xlu1 %1421  ;;  %v1417_v22 = vadd.f32 %v1415_v9, %v1407_v12  ;;  %v1418_v23 = vadd.f32 %v1416_v10, %v1408_v16  ;;  %v2479_v16 = vld [vmem:[%s3393_s5 + $0x6c] sm:$0xff]  }
 0x5da   : > { %v1423_v4 = vsel %vm520_vm5, %v1420_v43, %v1422_v49  ;;  %v1424_v8 = vsel %vm520_vm5, %v1422_v49, %v1420_v43 }
 0x5db   : > { %v1425_v17 = vmul.f32 %v1424_v8, %v2714_v18  ;;  %v1426_v20 = vmul.f32 %v1423_v4, %v2717_v19 }
 0x5dd   : > { %v1427_v29 = vadd.f32 %v1425_v17, %v1417_v22  ;;  %v1428_v30 = vadd.f32 %v1426_v20, %v1418_v23  ;;  %v2481_v17 = vld [vmem:[%s3393_s5 + $0x7c] sm:$0xff]   ;;  %v2482_v20 = vld [vmem:[%s3393_s5 + $0x84] sm:$0xff]  }
 0x5de   : > { %v1430_v58 = vpop.permute.xlu0 %1429 }
 0x5df   : > { %v1432_v3 = vpop.permute.xlu1 %1431 }
 0x5e0   : > { %v1433_v50 = vsel %vm544_vm6, %v1430_v58, %v1432_v3  ;;  %v1434_v51 = vsel %vm544_vm6, %v1432_v3, %v1430_v58 }
 0x5e1   : > { %v1435_v24 = vmul.f32 %v1433_v50, %v2730_v25  ;;  %v1436_v27 = vmul.f32 %v1434_v51, %v2733_v26 }
 0x5e3   : > { %v1437_v40 = vadd.f32 %v1435_v24, %v1427_v29  ;;  %v1438_v41 = vadd.f32 %v1436_v27, %v1428_v30 }
 0x5e4   : > { %v1440_v11 = vpop.permute.xlu0 %1439 }
 0x5e5   : > { %v1442_v21 = vpop.permute.xlu1 %1441 }
 0x5e6   : > { %v1443_v13 = vsel %vm568_vm7, %v1440_v11, %v1442_v21  ;;  %v1444_v15 = vsel %vm568_vm7, %v1442_v21, %v1440_v11  ;;  %v2483_v21 = vld [vmem:[%s3393_s5 + $0x8c] ss:$0 sps:$4 sm:$0xff]  }
 0x5e7   : > { %v1445_v32 = vmul.f32 %v1443_v13, %v2743_v34  ;;  %v1446_v36 = vmul.f32 %v1444_v15, %v2749_v38 }
 0x5e8   : > { %v1450_v28 = vpop.permute.xlu0 %1449 }
 0x5e9   : > { %v1452_v37 = vpop.permute.xlu1 %1451  ;;  %v1447_v49 = vadd.f32 %v1445_v32, %v1437_v40  ;;  %v1448_v52 = vadd.f32 %v1446_v36, %v1438_v41 }
 0x5ea   : > { %v1453_v39 = vsel %vm592_vm8, %v1450_v28, %v1452_v37  ;;  %v1454_v5 = vsel %vm592_vm8, %v1452_v37, %v1450_v28 }
 0x5eb   : > { %v1455_v42 = vmul.f32 %v1453_v39, %v2762_v46  ;;  %v1456_v43 = vmul.f32 %v1454_v5, %v2765_v47 }
 0x5ed   : > { %v1460_v44 = vpop.permute.xlu1 %1459  ;;  %v1462_v45 = vpop.permute.xlu0 %1461  ;;  %v1457_v57 = vadd.f32 %v1455_v42, %v1447_v49  ;;  %v1458_v58 = vadd.f32 %v1456_v43, %v1448_v52 }
 0x5ee   : > { %v1463_v53 = vsel %vm616_vm9, %v1460_v44, %v1462_v45  ;;  %v1464_v56 = vsel %vm616_vm9, %v1462_v45, %v1460_v44  ;;  %v2384_v44 = vld [vmem:[%s3394_s6 + $0x28] sm:$0xff] }
 0x5ef   : > { %v1465_v1 = vmul.f32 %v1463_v53, %v2775_v59  ;;  %v1466_v14 = vmul.f32 %v1464_v56, %v2778_v61 }
 0x5f1   : > { %v1467_v3 = vadd.f32 %v1465_v1, %v1457_v57  ;;  %v1468_v4 = vadd.f32 %v1466_v14, %v1458_v58 }
 0x5f3   : > { %v1476_v8 = vadd.f32 %v3038_v31, %v1467_v3  ;;  %v1477_v62 = vadd.f32 %v3038_v31, %v1468_v4  ;;  %v2480_v31 = vld [vmem:[%s3393_s5 + $0x74] sm:$0xff]  }
 0x5f5   : > { %v1481_v63 = vmul.f32 0.01, %v1477_v62  ;;  %vm1479_vm10 = vcmp.ge.f32.partialorder %v1477_v62, 0.0  ;;  %vm1478_vm11 = vcmp.ge.f32.partialorder %v1476_v8, 0.0  ;;  %v1480_v9 = vmul.f32 0.01, %v1476_v8 }
 0x5f7   : > { %v1483_v10 = vsel %vm1479_vm10, %v1477_v62, %v1481_v63  ;;  %v1482_v50 = vsel %vm1478_vm11, %v1476_v8, %v1480_v9 }
 0x5f8   : > { %v1485_v51 = vpack.c.bf16 %v1483_v10, %v1483_v10  ;;  %v1484_v11 = vpack.c.bf16 %v1482_v50, %v1482_v50 }
 0x5fa   : > { %2357 = vmatprep.subr.msk.bf16.mxu1 %vm355_vm0, %v1485_v51  ;;  %v1535_v12 = vsel %vm355_vm0, %v1484_v11, 0 }
 0x5fb   : > { %1541 = vmatpush1.bf16.msra.mxu1 %v1535_v12 }
 0x5fe   : > { %2358 = vmatmul.mubr.msk.bf16.vlgmr.msra.gmra.mrb[20].mxu1 %vm339_vm1, %v2479_v16  ;;  %v3136_v45 = vpop.permute.xlu1 %1705 }
 0x5ff   : > { %1582 = vmatprep.mubr.bf16.mxu1 %v2502_v0 }
 0x606   : > { %2359 = vmatmul.mubr.msk.bf16.gmra.mrb[24].mxu1 %vm339_vm1, %v2480_v31 }
 0x607   : > { %1592 = vmatprep.mubr.bf16.mxu1 %v2502_v0 }
 0x60e   : > { %2360 = vmatmul.mubr.msk.bf16.gmra.mrb[28].mxu1 %vm339_vm1, %v2481_v17 }
 0x60f   : > { %1602 = vmatprep.mubr.bf16.mxu1 %v2502_v0 }
 0x616   : > { %2361 = vmatmul.mubr.msk.bf16.gmra.mrb[32].mxu1 %vm339_vm1, %v2482_v20 }
 0x617   : > { %1612 = vmatprep.mubr.bf16.mxu1 %v2502_v0 }
 0x61e   : > { %2362 = vmatmul.mubr.msk.bf16.gmra.mrb[36].mxu1 %vm339_vm1, %v2483_v21 }
 0x61f   : > { %2032 = vmatprep.mubr.bf16.mxu1 %v2502_v0 }
 0x6d1   : > { %v1574_v13 = vpop.f32.mrb[20].mxu1 }
 0x6d2   : > { %1621 = vrot.lane.b32.xlu1 %v1574_v13, %s2503_s20  ;;  %v1576_v15 = vpop.f32.mrb[21].mxu1 }
 0x6d3   : > { %1623 = vrot.lane.b32.xlu0 %v1576_v15, %s2503_s20  ;;  %v1578_v22 = vpop.f32.mrb[22].mxu1 }
 0x6d4   : > { %v1580_v23 = vpop.f32.mrb[23].mxu1 }
 0x6d6   : > { %1631 = vrot.lane.b32.xlu1 %v1578_v22, %s2504_s23 }
 0x6d7   : > { %1633 = vrot.lane.b32.xlu0 %v1580_v23, %s2504_s23 }
 0x6d9   : > { %v1584_v24 = vpop.f32.mrb[24].mxu1 }
 0x6da   : > { %1641 = vrot.lane.b32.xlu1 %v1584_v24, %s2505_s26  ;;  %v1586_v27 = vpop.f32.mrb[25].mxu1 }
 0x6db   : > { %1643 = vrot.lane.b32.xlu0 %v1586_v27, %s2505_s26  ;;  %v1588_v28 = vpop.f32.mrb[26].mxu1 }
 0x6dc   : > { %v1590_v29 = vpop.f32.mrb[27].mxu1 }
 0x6de   : > { %1651 = vrot.lane.b32.xlu1 %v1588_v28, %s2506_s29 }
 0x6df   : > { %1653 = vrot.lane.b32.xlu0 %v1590_v29, %s2506_s29 }
 0x6e1   : > { %v1594_v30 = vpop.f32.mrb[28].mxu1 }
 0x6e2   : > { %v1596_v32 = vpop.f32.mrb[29].mxu1 }
 0x6e3   : > { %v1598_v36 = vpop.f32.mrb[30].mxu1 }
 0x6e4   : > { %1661 = vrot.lane.b32.xlu1 %v1598_v36, %s2507_s9  ;;  %v1600_v37 = vpop.f32.mrb[31].mxu1 }
 0x6e5   : > { %1663 = vrot.lane.b32.xlu0 %v1600_v37, %s2507_s9 }
 0x6e9   : > { %v1604_v39 = vpop.f32.mrb[32].mxu1 }
 0x6ea   : > { %1671 = vrot.lane.b32.xlu1 %v1604_v39, %s2508_s10  ;;  %v1606_v5 = vpop.f32.mrb[33].mxu1 }
 0x6eb   : > { %1673 = vrot.lane.b32.xlu0 %v1606_v5, %s2508_s10  ;;  %v1608_v40 = vpop.f32.mrb[34].mxu1 }
 0x6ec   : > { %v1610_v41 = vpop.f32.mrb[35].mxu1 }
 0x6ee   : > { %1681 = vrot.lane.b32.xlu1 %v1608_v40, %s2509_s13 }
 0x6ef   : > { %1683 = vrot.lane.b32.xlu0 %v1610_v41, %s2509_s13 }
 0x6f1   : > { %v1614_v42 = vpop.f32.mrb[36].mxu1 }
 0x6f2   : > { %v1616_v43 = vpop.f32.mrb[37].mxu1 }
 0x6f3   : > { %1691 = vrot.lane.b32.xlu0 %v1614_v42, %s2510_s16  ;;  %1693 = vrot.lane.b32.xlu1 %v1616_v43, %s2510_s16  ;;  %v1618_v49 = vpop.f32.mrb[38].mxu1 }
 0x6f4   : > { %v1619_v52 = vpop.f32.mrb[39].mxu1 }
 0x6f7   : > { %1937 = vperm.xlu0 %2448, %v2384_v44  }
 0x744   : > { %v1622_v53 = vpop.permute.xlu1 %1621 }
 0x745   : > { %v1624_v56 = vpop.permute.xlu0 %1623 }
 0x746   : > { %v1625_v3 = vsel %vm449_vm2, %v1622_v53, %v1624_v56  ;;  %v1626_v4 = vsel %vm449_vm2, %v1624_v56, %v1622_v53 }
 0x747   : > { %v1627_v10 = vmul.f32 %v1626_v4, %v2663_v54  ;;  %v1628_v50 = vmul.f32 %v1625_v3, %v2666_v55 }
 0x748   : > { %v1632_v57 = vpop.permute.xlu1 %1631 }
 0x749   : > { %v1634_v58 = vpop.permute.xlu0 %1633  ;;  %v1629_v13 = vadd.f32 %v1627_v10, %v1594_v30  ;;  %v1630_v15 = vadd.f32 %v1628_v50, %v1596_v32 }
 0x74a   : > { %v1635_v63 = vsel %vm472_vm3, %v1632_v57, %v1634_v58  ;;  %v1636_v9 = vsel %vm472_vm3, %v1634_v58, %v1632_v57 }
 0x74b   : > { %v1637_v16 = vmul.f32 %v1636_v9, %v2677_v60  ;;  %v1638_v31 = vmul.f32 %v1635_v63, %v2685_v2 }
 0x74c   : > { %v1642_v1 = vpop.permute.xlu1 %1641 }
 0x74d   : > { %v1644_v14 = vpop.permute.xlu0 %1643  ;;  %v1639_v29 = vadd.f32 %v1637_v16, %v1629_v13  ;;  %v1640_v36 = vadd.f32 %v1638_v31, %v1630_v15 }
 0x74e   : > { %v1645_v51 = vsel %vm496_vm4, %v1642_v1, %v1644_v14  ;;  %v1646_v11 = vsel %vm496_vm4, %v1644_v14, %v1642_v1 }
 0x74f   : > { %v1647_v22 = vmul.f32 %v1646_v11, %v2693_v6  ;;  %v1648_v23 = vmul.f32 %v1645_v51, %v2696_v7 }
 0x750   : > { %v1652_v8 = vpop.permute.xlu1 %1651 }
 0x751   : > { %v1654_v62 = vpop.permute.xlu0 %1653  ;;  %v1649_v40 = vadd.f32 %v1647_v22, %v1639_v29  ;;  %v1650_v41 = vadd.f32 %v1648_v23, %v1640_v36  ;;  %v2484_v36 = vld [vmem:[%s3393_s5 + $0x90] sm:$0xff]  }
 0x752   : > { %v1655_v20 = vsel %vm520_vm5, %v1652_v8, %v1654_v62  ;;  %v1656_v21 = vsel %vm520_vm5, %v1654_v62, %v1652_v8 }
 0x753   : > { %v1657_v37 = vmul.f32 %v1656_v21, %v2714_v18  ;;  %v1658_v39 = vmul.f32 %v1655_v20, %v2717_v19 }
 0x755   : > { %v1659_v52 = vadd.f32 %v1657_v37, %v1649_v40  ;;  %v1660_v44 = vadd.f32 %v1658_v39, %v1650_v41  ;;  %v2486_v37 = vld [vmem:[%s3393_s5 + $0xa0] sm:$0xff]   ;;  %v2487_v39 = vld [vmem:[%s3393_s5 + $0xa8] sm:$0xff]  }
 0x756   : > { %v1662_v12 = vpop.permute.xlu1 %1661 }
 0x757   : > { %v1664_v17 = vpop.permute.xlu0 %1663 }
 0x758   : > { %v1665_v24 = vsel %vm544_vm6, %v1662_v12, %v1664_v17  ;;  %v1666_v27 = vsel %vm544_vm6, %v1664_v17, %v1662_v12 }
 0x759   : > { %v1667_v42 = vmul.f32 %v1665_v24, %v2730_v25  ;;  %v1668_v43 = vmul.f32 %v1666_v27, %v2733_v26 }
 0x75b   : > { %v1669_v14 = vadd.f32 %v1667_v42, %v1659_v52  ;;  %v1670_v3 = vadd.f32 %v1668_v43, %v1660_v44 }
 0x75c   : > { %v1672_v28 = vpop.permute.xlu1 %1671 }
 0x75d   : > { %v1674_v5 = vpop.permute.xlu0 %1673 }
 0x75e   : > { %v1675_v30 = vsel %vm568_vm7, %v1672_v28, %v1674_v5  ;;  %v1676_v32 = vsel %vm568_vm7, %v1674_v5, %v1672_v28  ;;  %v2488_v5 = vld [vmem:[%s3393_s5 + $0xb0] ss:$0 sps:$4 sm:$0xff]  }
 0x75f   : > { %v1677_v53 = vmul.f32 %v1675_v30, %v2743_v34  ;;  %v1678_v56 = vmul.f32 %v1676_v32, %v2749_v38 }
 0x760   : > { %v1682_v49 = vpop.permute.xlu1 %1681 }
 0x761   : > { %v1684_v57 = vpop.permute.xlu0 %1683  ;;  %v1679_v62 = vadd.f32 %v1677_v53, %v1669_v14  ;;  %v1680_v63 = vadd.f32 %v1678_v56, %v1670_v3 }
 0x762   : > { %v1685_v58 = vsel %vm592_vm8, %v1682_v49, %v1684_v57  ;;  %v1686_v1 = vsel %vm592_vm8, %v1684_v57, %v1682_v49 }
 0x763   : > { %v1687_v4 = vmul.f32 %v1685_v58, %v2762_v46  ;;  %v1688_v8 = vmul.f32 %v1686_v1, %v2765_v47 }
 0x765   : > { %v1692_v9 = vpop.permute.xlu0 %1691  ;;  %v1694_v10 = vpop.permute.xlu1 %1693  ;;  %v1689_v11 = vadd.f32 %v1687_v4, %v1679_v62  ;;  %v1690_v12 = vadd.f32 %v1688_v8, %v1680_v63 }
 0x766   : > { %v1695_v50 = vsel %vm616_vm9, %v1692_v9, %v1694_v10  ;;  %v1696_v51 = vsel %vm616_vm9, %v1694_v10, %v1692_v9  ;;  %v2405_v9 = vld [vmem:[%s3394_s6 + $0x30] sm:$0xff] }
 0x767   : > { %v1697_v16 = vmul.f32 %v1695_v50, %v2775_v59  ;;  %v1698_v31 = vmul.f32 %v1696_v51, %v2778_v61 }
 0x769   : > { %v1699_v17 = vadd.f32 %v1697_v16, %v1689_v11  ;;  %v1700_v20 = vadd.f32 %v1698_v31, %v1690_v12 }
 0x76b   : > { %v1708_v21 = vadd.f32 %v3136_v45, %v1699_v17  ;;  %v1709_v13 = vadd.f32 %v3136_v45, %v1700_v20  ;;  %v2485_v45 = vld [vmem:[%s3393_s5 + $0x98] sm:$0xff]  }
 0x76d   : > { %v1713_v15 = vmul.f32 0.01, %v1709_v13  ;;  %vm1711_vm12 = vcmp.ge.f32.partialorder %v1709_v13, 0.0  ;;  %vm1710_vm13 = vcmp.ge.f32.partialorder %v1708_v21, 0.0  ;;  %v1712_v22 = vmul.f32 0.01, %v1708_v21 }
 0x76f   : > { %v1715_v23 = vsel %vm1711_vm12, %v1709_v13, %v1713_v15  ;;  %v1714_v24 = vsel %vm1710_vm13, %v1708_v21, %v1712_v22 }
 0x770   : > { %v1717_v27 = vpack.c.bf16 %v1715_v23, %v1715_v23  ;;  %v1716_v28 = vpack.c.bf16 %v1714_v24, %v1714_v24 }
 0x772   : > { %2378 = vmatprep.subr.msk.bf16.mxu0 %vm355_vm0, %v1717_v27  ;;  %v1767_v29 = vsel %vm355_vm0, %v1716_v28, 0 }
 0x773   : > { %1773 = vmatpush1.bf16.msra.mxu0 %v1767_v29 }
 0x776   : > { %2379 = vmatmul.mubr.msk.bf16.vlgmr.msra.gmra.mrb[60].mxu0 %vm339_vm1, %v2484_v36  ;;  %v3233_v10 = vpop.permute.xlu0 %1937 }
 0x777   : > { %1814 = vmatprep.mubr.bf16.mxu0 %v2502_v0 }
 0x77e   : > { %2380 = vmatmul.mubr.msk.bf16.gmra.mrb[64].mxu0 %vm339_vm1, %v2485_v45 }
 0x77f   : > { %1824 = vmatprep.mubr.bf16.mxu0 %v2502_v0 }
 0x786   : > { %2381 = vmatmul.mubr.msk.bf16.gmra.mrb[68].mxu0 %vm339_vm1, %v2486_v37 }
 0x787   : > { %1834 = vmatprep.mubr.bf16.mxu0 %v2502_v0 }
 0x78e   : > { %2382 = vmatmul.mubr.msk.bf16.gmra.mrb[72].mxu0 %vm339_vm1, %v2487_v39 }
 0x78f   : > { %1844 = vmatprep.mubr.bf16.mxu0 %v2502_v0 }
 0x796   : > { %2383 = vmatmul.mubr.msk.bf16.gmra.mrb[76].mxu0 %vm339_vm1, %v2488_v5 }
 0x849   : > { %v1806_v30 = vpop.f32.mrb[60].mxu0 }
 0x84a   : > { %1853 = vrot.lane.b32.xlu0 %v1806_v30, %s2503_s20  ;;  %v1808_v32 = vpop.f32.mrb[61].mxu0 }
 0x84b   : > { %1855 = vrot.lane.b32.xlu1 %v1808_v32, %s2503_s20  ;;  %v1810_v40 = vpop.f32.mrb[62].mxu0 }
 0x84c   : > { %v1812_v41 = vpop.f32.mrb[63].mxu0 }
 0x84e   : > { %1863 = vrot.lane.b32.xlu0 %v1810_v40, %s2504_s23 }
 0x84f   : > { %1865 = vrot.lane.b32.xlu1 %v1812_v41, %s2504_s23 }
 0x851   : > { %v1816_v42 = vpop.f32.mrb[64].mxu0 }
 0x852   : > { %1873 = vrot.lane.b32.xlu0 %v1816_v42, %s2505_s26  ;;  %v1818_v43 = vpop.f32.mrb[65].mxu0 }
 0x853   : > { %1875 = vrot.lane.b32.xlu1 %v1818_v43, %s2505_s26  ;;  %v1820_v49 = vpop.f32.mrb[66].mxu0 }
 0x854   : > { %v1822_v52 = vpop.f32.mrb[67].mxu0 }
 0x856   : > { %1883 = vrot.lane.b32.xlu0 %v1820_v49, %s2506_s29 }
 0x857   : > { %1885 = vrot.lane.b32.xlu1 %v1822_v52, %s2506_s29 }
 0x859   : > { %v1826_v44 = vpop.f32.mrb[68].mxu0 }
 0x85a   : > { %v1828_v53 = vpop.f32.mrb[69].mxu0 }
 0x85b   : > { %v1830_v56 = vpop.f32.mrb[70].mxu0 }
 0x85c   : > { %1893 = vrot.lane.b32.xlu0 %v1830_v56, %s2507_s9  ;;  %v1832_v57 = vpop.f32.mrb[71].mxu0 }
 0x85d   : > { %1895 = vrot.lane.b32.xlu1 %v1832_v57, %s2507_s9 }
 0x861   : > { %v1836_v58 = vpop.f32.mrb[72].mxu0 }
 0x862   : > { %1903 = vrot.lane.b32.xlu0 %v1836_v58, %s2508_s10  ;;  %v1838_v1 = vpop.f32.mrb[73].mxu0 }
 0x863   : > { %1905 = vrot.lane.b32.xlu1 %v1838_v1, %s2508_s10  ;;  %v1840_v14 = vpop.f32.mrb[74].mxu0 }
 0x864   : > { %v1842_v3 = vpop.f32.mrb[75].mxu0 }
 0x866   : > { %1913 = vrot.lane.b32.xlu0 %v1840_v14, %s2509_s13 }
 0x867   : > { %1915 = vrot.lane.b32.xlu1 %v1842_v3, %s2509_s13 }
 0x869   : > { %v1846_v4 = vpop.f32.mrb[76].mxu0 }
 0x86a   : > { %v1848_v8 = vpop.f32.mrb[77].mxu0 }
 0x86b   : > { %1923 = vrot.lane.b32.xlu1 %v1846_v4, %s2510_s16  ;;  %1925 = vrot.lane.b32.xlu0 %v1848_v8, %s2510_s16  ;;  %v1850_v62 = vpop.f32.mrb[78].mxu0 }
 0x86c   : > { %v1851_v63 = vpop.f32.mrb[79].mxu0 }
 0x86f   : > { %2165 = vperm.xlu1 %2449, %v2405_v9  }
 0x8bc   : > { %v1854_v50 = vpop.permute.xlu0 %1853 }
 0x8bd   : > { %v1856_v51 = vpop.permute.xlu1 %1855 }
 0x8be   : > { %v1857_v17 = vsel %vm449_vm2, %v1854_v50, %v1856_v51  ;;  %v1858_v20 = vsel %vm449_vm2, %v1856_v51, %v1854_v50 }
 0x8bf   : > { %v1859_v23 = vmul.f32 %v1858_v20, %v2663_v54  ;;  %v1860_v24 = vmul.f32 %v1857_v17, %v2666_v55 }
 0x8c0   : > { %v1864_v11 = vpop.permute.xlu0 %1863 }
 0x8c1   : > { %v1866_v12 = vpop.permute.xlu1 %1865  ;;  %v1861_v30 = vadd.f32 %v1859_v23, %v1826_v44  ;;  %v1862_v32 = vadd.f32 %v1860_v24, %v1828_v53 }
 0x8c2   : > { %v1867_v15 = vsel %vm472_vm3, %v1864_v11, %v1866_v12  ;;  %v1868_v22 = vsel %vm472_vm3, %v1866_v12, %v1864_v11 }
 0x8c3   : > { %v1869_v36 = vmul.f32 %v1868_v22, %v2677_v60  ;;  %v1870_v45 = vmul.f32 %v1867_v15, %v2685_v2 }
 0x8c4   : > { %v1874_v16 = vpop.permute.xlu0 %1873 }
 0x8c5   : > { %v1876_v31 = vpop.permute.xlu1 %1875  ;;  %v1871_v52 = vadd.f32 %v1869_v36, %v1861_v30  ;;  %v1872_v56 = vadd.f32 %v1870_v45, %v1862_v32 }
 0x8c6   : > { %v1877_v27 = vsel %vm496_vm4, %v1874_v16, %v1876_v31  ;;  %v1878_v28 = vsel %vm496_vm4, %v1876_v31, %v1874_v16 }
 0x8c7   : > { %v1879_v40 = vmul.f32 %v1878_v28, %v2693_v6  ;;  %v1880_v41 = vmul.f32 %v1877_v27, %v2696_v7 }
 0x8c8   : > { %v1884_v21 = vpop.permute.xlu0 %1883 }
 0x8c9   : > { %v1886_v13 = vpop.permute.xlu1 %1885  ;;  %v1881_v14 = vadd.f32 %v1879_v40, %v1871_v52  ;;  %v1882_v3 = vadd.f32 %v1880_v41, %v1872_v56  ;;  %v2493_v52 = vld [vmem:[%s3393_s5 + $0xd4] ss:$0 sps:$4 sm:$0xff]  }
 0x8ca   : > { %v1887_v39 = vsel %vm520_vm5, %v1884_v21, %v1886_v13  ;;  %v1888_v5 = vsel %vm520_vm5, %v1886_v13, %v1884_v21 }
 0x8cb   : > { %v1889_v57 = vmul.f32 %v1888_v5, %v2714_v18  ;;  %v1890_v58 = vmul.f32 %v1887_v39, %v2717_v19 }
 0x8cd   : > { %v1891_v63 = vadd.f32 %v1889_v57, %v1881_v14  ;;  %v1892_v9 = vadd.f32 %v1890_v58, %v1882_v3 }
 0x8ce   : > { %v1894_v29 = vpop.permute.xlu0 %1893 }
 0x8cf   : > { %v1896_v37 = vpop.permute.xlu1 %1895 }
 0x8d0   : > { %v1897_v42 = vsel %vm544_vm6, %v1894_v29, %v1896_v37  ;;  %v1898_v43 = vsel %vm544_vm6, %v1896_v37, %v1894_v29 }
 0x8d1   : > { %v1899_v4 = vmul.f32 %v1897_v42, %v2730_v25  ;;  %v1900_v8 = vmul.f32 %v1898_v43, %v2733_v26 }
 0x8d3   : > { %v1901_v31 = vadd.f32 %v1899_v4, %v1891_v63  ;;  %v1902_v17 = vadd.f32 %v1900_v8, %v1892_v9 }
 0x8d4   : > { %v1904_v49 = vpop.permute.xlu0 %1903 }
 0x8d5   : > { %v1906_v1 = vpop.permute.xlu1 %1905 }
 0x8d6   : > { %v1907_v44 = vsel %vm568_vm7, %v1904_v49, %v1906_v1  ;;  %v1908_v53 = vsel %vm568_vm7, %v1906_v1, %v1904_v49  ;;  %v2489_v49 = vld [vmem:[%s3393_s5 + $0xb4] sm:$0xff]  }
 0x8d7   : > { %v1909_v50 = vmul.f32 %v1907_v44, %v2743_v34  ;;  %v1910_v51 = vmul.f32 %v1908_v53, %v2749_v38 }
 0x8d8   : > { %v1914_v62 = vpop.permute.xlu0 %1913 }
 0x8d9   : > { %v1916_v11 = vpop.permute.xlu1 %1915  ;;  %v1911_v13 = vadd.f32 %v1909_v50, %v1901_v31  ;;  %v1912_v15 = vadd.f32 %v1910_v51, %v1902_v17 }
 0x8da   : > { %v1917_v12 = vsel %vm592_vm8, %v1914_v62, %v1916_v11  ;;  %v1918_v16 = vsel %vm592_vm8, %v1916_v11, %v1914_v62 }
 0x8db   : > { %v1919_v20 = vmul.f32 %v1917_v12, %v2762_v46  ;;  %v1920_v21 = vmul.f32 %v1918_v16, %v2765_v47 }
 0x8dd   : > { %v1924_v22 = vpop.permute.xlu1 %1923  ;;  %v1926_v23 = vpop.permute.xlu0 %1925  ;;  %v1921_v28 = vadd.f32 %v1919_v20, %v1911_v13  ;;  %v1922_v29 = vadd.f32 %v1920_v21, %v1912_v15 }
 0x8de   : > { %v1927_v24 = vsel %vm616_vm9, %v1924_v22, %v1926_v23  ;;  %v1928_v27 = vsel %vm616_vm9, %v1926_v23, %v1924_v22 }
 0x8df   : > { %v1929_v36 = vmul.f32 %v1927_v24, %v2775_v59  ;;  %v1930_v45 = vmul.f32 %v1928_v27, %v2778_v61 }
 0x8e1   : > { %v1931_v37 = vadd.f32 %v1929_v36, %v1921_v28  ;;  %v1932_v39 = vadd.f32 %v1930_v45, %v1922_v29 }
 0x8e3   : > { %v1940_v5 = vadd.f32 %v3233_v10, %v1931_v37  ;;  %v1941_v30 = vadd.f32 %v3233_v10, %v1932_v39  ;;  %v2492_v10 = vld [vmem:[%s3393_s5 + $0xcc] sm:$0xff]  }
 0x8e5   : > { %v1943_v32 = vadd.f32 %v1941_v30, %v2886_v33  ;;  %v1942_v40 = vadd.f32 %v1940_v5, %v2888_v35  ;;  %v2490_v33 = vld [vmem:[%s3393_s5 + $0xbc] sm:$0xff]   ;;  %v2491_v35 = vld [vmem:[%s3393_s5 + $0xc4] sm:$0xff]  }
 0x8e7   : > { %v1945_v41 = vpack.c.bf16 %v1943_v32, %v1943_v32  ;;  %v1944_v42 = vpack.c.bf16 %v1942_v40, %v1942_v40 }
 0x8e9   : > { %2399 = vmatprep.subr.msk.bf16.mxu1 %vm355_vm0, %v1945_v41  ;;  %v1995_v43 = vsel %vm355_vm0, %v1944_v42, 0 }
 0x8ea   : > { %2001 = vmatpush1.bf16.msra.mxu1 %v1995_v43 }
 0x8ed   : > { %2400 = vmatmul.mubr.msk.bf16.vlgmr.msra.gmra.mrb[40].mxu1 %vm339_vm1, %v2489_v49 }
 0x8ee   : > { %2042 = vmatprep.mubr.bf16.mxu1 %v2502_v0  ;;  %v3329_v17 = vpop.permute.xlu1 %2165 }
 0x8f5   : > { %2401 = vmatmul.mubr.msk.bf16.gmra.mrb[44].mxu1 %vm339_vm1, %v2490_v33 }
 0x8f6   : > { %2052 = vmatprep.mubr.bf16.mxu1 %v2502_v0 }
 0x8fd   : > { %2402 = vmatmul.mubr.msk.bf16.gmra.mrb[48].mxu1 %vm339_vm1, %v2491_v35 }
 0x8fe   : > { %2062 = vmatprep.mubr.bf16.mxu1 %v2502_v0 }
 0x905   : > { %2403 = vmatmul.mubr.msk.bf16.gmra.mrb[52].mxu1 %vm339_vm1, %v2492_v10 }
 0x906   : > { %2072 = vmatprep.mubr.bf16.mxu1 %v2502_v0 }
 0x90d   : > { %2404 = vmatmul.mubr.msk.bf16.gmra.mrb[56].mxu1 %vm339_vm1, %v2493_v52 }
 0x9c0   : > { %v2034_v56 = vpop.f32.mrb[40].mxu1 }
 0x9c1   : > { %v2036_v57 = vpop.f32.mrb[41].mxu1  ;;  %2081 = vrot.lane.b32.xlu1 %v2034_v56, %s2503_s20 }
 0x9c2   : > { %2083 = vrot.lane.b32.xlu0 %v2036_v57, %s2503_s20  ;;  %v2038_v58 = vpop.f32.mrb[42].mxu1  ;;  %s2410_s20 = sshll.u32 %s3397_s25, 4 }
 0x9c3   : > { %v2040_v1 = vpop.f32.mrb[43].mxu1 }
 0x9c5   : > { %2091 = vrot.lane.b32.xlu1 %v2038_v58, %s2504_s23 }
 0x9c6   : > { %2093 = vrot.lane.b32.xlu0 %v2040_v1, %s2504_s23 }
 0x9c8   : > { %v2044_v44 = vpop.f32.mrb[44].mxu1 }
 0x9c9   : > { %v2046_v0 = vpop.f32.mrb[45].mxu1  ;;  %2101 = vrot.lane.b32.xlu1 %v2044_v44, %s2505_s26 }
 0x9ca   : > { %2103 = vrot.lane.b32.xlu0 %v2046_v0, %s2505_s26  ;;  %v2048_v53 = vpop.f32.mrb[46].mxu1 }
 0x9cb   : > { %v2050_v14 = vpop.f32.mrb[47].mxu1 }
 0x9cd   : > { %2111 = vrot.lane.b32.xlu1 %v2048_v53, %s2506_s29 }
 0x9ce   : > { %2113 = vrot.lane.b32.xlu0 %v2050_v14, %s2506_s29  ;;  %s298_s29 = scalar_lea.vmem %s3395_s7, %s2410_s20 }
 0x9d0   : > { %v2054_v3 = vpop.f32.mrb[48].mxu1 }
 0x9d1   : > { %v2056_v4 = vpop.f32.mrb[49].mxu1 }
 0x9d2   : > { %v2058_v8 = vpop.f32.mrb[50].mxu1 }
 0x9d3   : > { %v2060_v62 = vpop.f32.mrb[51].mxu1  ;;  %2121 = vrot.lane.b32.xlu1 %v2058_v8, %s2507_s9 }
 0x9d4   : > { %2123 = vrot.lane.b32.xlu0 %v2060_v62, %s2507_s9 }
 0x9d8   : > { %v2064_v63 = vpop.f32.mrb[52].mxu1 }
 0x9d9   : > { %v2066_v9 = vpop.f32.mrb[53].mxu1  ;;  %2131 = vrot.lane.b32.xlu1 %v2064_v63, %s2508_s10 }
 0x9da   : > { %2133 = vrot.lane.b32.xlu0 %v2066_v9, %s2508_s10  ;;  %v2068_v50 = vpop.f32.mrb[54].mxu1 }
 0x9db   : > { %v2070_v51 = vpop.f32.mrb[55].mxu1 }
 0x9dd   : > { %2141 = vrot.lane.b32.xlu1 %v2068_v50, %s2509_s13 }
 0x9de   : > { %2143 = vrot.lane.b32.xlu0 %v2070_v51, %s2509_s13 }
 0x9e0   : > { %v2074_v11 = vpop.f32.mrb[56].mxu1 }
 0x9e1   : > { %v2076_v12 = vpop.f32.mrb[57].mxu1 }
 0x9e2   : > { %2151 = vrot.lane.b32.xlu0 %v2074_v11, %s2510_s16  ;;  %2153 = vrot.lane.b32.xlu1 %v2076_v12, %s2510_s16  ;;  %v2078_v16 = vpop.f32.mrb[58].mxu1 }
 0x9e3   : > { %v2079_v31 = vpop.f32.mrb[59].mxu1 }
 0xa33   : > { %v2082_v20 = vpop.permute.xlu1 %2081 }
 0xa34   : > { %v2084_v21 = vpop.permute.xlu0 %2083 }
 0xa35   : > { %v2085_v24 = vsel %vm449_vm2, %v2082_v20, %v2084_v21  ;;  %v2086_v27 = vsel %vm449_vm2, %v2084_v21, %v2082_v20 }
 0xa36   : > { %v2087_v37 = vmul.f32 %v2086_v27, %v2663_v54  ;;  %v2088_v39 = vmul.f32 %v2085_v24, %v2666_v55 }
 0xa37   : > { %v2092_v13 = vpop.permute.xlu1 %2091 }
 0xa38   : > { %v2094_v15 = vpop.permute.xlu0 %2093  ;;  %v2089_v49 = vadd.f32 %v2087_v37, %v2054_v3  ;;  %v2090_v55 = vadd.f32 %v2088_v39, %v2056_v4 }
 0xa39   : > { %v2095_v36 = vsel %vm472_vm3, %v2092_v13, %v2094_v15  ;;  %v2096_v45 = vsel %vm472_vm3, %v2094_v15, %v2092_v13 }
 0xa3a   : > { %v2097_v40 = vmul.f32 %v2096_v45, %v2677_v60  ;;  %v2098_v41 = vmul.f32 %v2095_v36, %v2685_v2 }
 0xa3b   : > { %v2102_v22 = vpop.permute.xlu1 %2101 }
 0xa3c   : > { %v2104_v23 = vpop.permute.xlu0 %2103  ;;  %v2099_v52 = vadd.f32 %v2097_v40, %v2089_v49  ;;  %v2100_v56 = vadd.f32 %v2098_v41, %v2090_v55 }
 0xa3d   : > { %v2105_v5 = vsel %vm496_vm4, %v2102_v22, %v2104_v23  ;;  %v2106_v30 = vsel %vm496_vm4, %v2104_v23, %v2102_v22 }
 0xa3e   : > { %v2107_v33 = vmul.f32 %v2106_v30, %v2693_v6  ;;  %v2108_v35 = vmul.f32 %v2105_v5, %v2696_v7 }
 0xa3f   : > { %v2112_v28 = vpop.permute.xlu1 %2111 }
 0xa40   : > { %v2114_v29 = vpop.permute.xlu0 %2113  ;;  %v2109_v7 = vadd.f32 %v2107_v33, %v2099_v52  ;;  %v2110_v0 = vadd.f32 %v2108_v35, %v2100_v56 }
 0xa41   : > { %v2115_v43 = vsel %vm520_vm5, %v2112_v28, %v2114_v29  ;;  %v2116_v54 = vsel %vm520_vm5, %v2114_v29, %v2112_v28 }
 0xa42   : > { %v2117_v57 = vmul.f32 %v2116_v54, %v2714_v18  ;;  %v2118_v58 = vmul.f32 %v2115_v43, %v2717_v19 }
 0xa44   : > { %v2119_v4 = vadd.f32 %v2117_v57, %v2109_v7  ;;  %v2120_v8 = vadd.f32 %v2118_v58, %v2110_v0 }
 0xa45   : > { %v2122_v32 = vpop.permute.xlu1 %2121 }
 0xa46   : > { %v2124_v42 = vpop.permute.xlu0 %2123 }
 0xa47   : > { %v2125_v10 = vsel %vm544_vm6, %v2122_v32, %v2124_v42  ;;  %v2126_v60 = vsel %vm544_vm6, %v2124_v42, %v2122_v32 }
 0xa48   : > { %v2127_v53 = vmul.f32 %v2125_v10, %v2730_v25  ;;  %v2128_v14 = vmul.f32 %v2126_v60, %v2733_v26 }
 0xa4a   : > { %v2129_v50 = vadd.f32 %v2127_v53, %v2119_v4  ;;  %v2130_v51 = vadd.f32 %v2128_v14, %v2120_v8 }
 0xa4b   : > { %v2132_v2 = vpop.permute.xlu1 %2131 }
 0xa4c   : > { %v2134_v1 = vpop.permute.xlu0 %2133 }
 0xa4d   : > { %v2135_v44 = vsel %vm568_vm7, %v2132_v2, %v2134_v1  ;;  %v2136_v6 = vsel %vm568_vm7, %v2134_v1, %v2132_v2 }
 0xa4e   : > { %v2137_v18 = vmul.f32 %v2135_v44, %v2743_v34  ;;  %v2138_v19 = vmul.f32 %v2136_v6, %v2749_v38 }
 0xa4f   : > { %v2142_v3 = vpop.permute.xlu1 %2141 }
 0xa50   : > { %v2144_v62 = vpop.permute.xlu0 %2143  ;;  %v2139_v11 = vadd.f32 %v2137_v18, %v2129_v50  ;;  %v2140_v12 = vadd.f32 %v2138_v19, %v2130_v51 }
 0xa51   : > { %v2145_v63 = vsel %vm592_vm8, %v2142_v3, %v2144_v62  ;;  %v2146_v9 = vsel %vm592_vm8, %v2144_v62, %v2142_v3 }
 0xa52   : > { %v2147_v25 = vmul.f32 %v2145_v63, %v2762_v46  ;;  %v2148_v26 = vmul.f32 %v2146_v9, %v2765_v47 }
 0xa54   : > { %v2152_v16 = vpop.permute.xlu0 %2151  ;;  %v2154_v34 = vpop.permute.xlu1 %2153  ;;  %v2149_v20 = vadd.f32 %v2147_v25, %v2139_v11  ;;  %v2150_v21 = vadd.f32 %v2148_v26, %v2140_v12 }
 0xa55   : > { %v2155_v38 = vsel %vm616_vm9, %v2152_v16, %v2154_v34  ;;  %v2156_v31 = vsel %vm616_vm9, %v2154_v34, %v2152_v16 }
 0xa56   : > { %v2157_v13 = vmul.f32 %v2155_v38, %v2775_v59  ;;  %v2158_v15 = vmul.f32 %v2156_v31, %v2778_v61 }
 0xa58   : > { %v2159_v22 = vadd.f32 %v2157_v13, %v2149_v20  ;;  %v2160_v46 = vadd.f32 %v2158_v15, %v2150_v21 }
 0xa5a   : > { %v2168_v47 = vadd.f32 %v3329_v17, %v2159_v22  ;;  %v2169_v23 = vadd.f32 %v3329_v17, %v2160_v46 }
 0xa5c   : > { %vm2170_vm0 = vcmp.ge.f32.partialorder %v2168_v47, 0.0  ;;  %vm2171_vm1 = vcmp.ge.f32.partialorder %v2169_v23, 0.0  ;;  %v2172_v48 = vmul.f32 0.01, %v2168_v47  ;;  %v2173_v24 = vmul.f32 0.01, %v2169_v23 }
 0xa5e   : > { %v2174_v27 = vsel %vm2170_vm0, %v2168_v47, %v2172_v48  ;;  %v2175_v28 = vsel %vm2171_vm1, %v2169_v23, %v2173_v24 }
 0xa5f   : > { %2176 = vst [vmem:[%s298_s29] sm:$0xff] %v2174_v27  ;;  %2177 = vst [vmem:[%s298_s29 + $0x8] sm:$0xff] %v2175_v28 }
 0xa60 PF: > { %s17_s24 = sadd.s32 1, %s2500_s24  }
 0xa61   : > { %p14_p4 = scmp.ge.s32.totalorder %s17_s24, 4  }
 0xa63   :  { %16 = sbr.rel (!%p14_p4) target bundleno = 1 (0x1), region = 99 }

</bundles_post_ra>
